<compile_context>
chip_gen: v6e
topology: v6e:2x2x1
jax: 0.10.0
libtpu: 0.0.40
codegen_flags: <defaults>
</compile_context>

<pallas_src>
import functools

import jax
import jax.numpy as jnp
import numpy as np
from jax.experimental import pallas as pl
from jax.experimental.pallas import tpu as pltpu

INPUT_DIM = 22
NUM_UNITS = 200
OUTPUT_DIM = 14
NUM_LAYERS = 4          # 3x (Linear + ReLU), 1 output Linear

HIDDEN_PAD = 256        # 200 -> 256: lane multiple, aligned to 256x256 MXU (v6e/v7x)
OUT_PAD = 128           # 14  -> 128: lane-dense (unmasked) output stores
COMPUTE_DTYPE = jnp.bfloat16   # MXU operand dtype (f32 accumulation everywhere)
OUT_DTYPE = jnp.bfloat16       # narrow output writeback (dominant HBM stream)


def _round_up(x, m):
    return ((x + m - 1) // m) * m


def _cdiv(a, b):
    return -(-a // b)


def _pick_tb(batch, tb_max=2048):
    """Batch-tile size.

    Big enough to amortize the ~0.35us fixed per-grid-step overhead, capped at
    tb_max (default 2048 -> safe under v5e's scoped VMEM even before the explicit
    limit), and for large batches an even number of >=2 steps so the "parallel"
    grid axis splits evenly across v7x's two TensorCores.
    """
    tb_max = max(8, (min(tb_max, 4096) // 8) * 8)
    if batch < 1024:
        # Tiny batch: splitting only adds per-step overhead; one (ragged) tile.
        return min(_round_up(batch, 8), tb_max)
    steps = max(2, _cdiv(batch, tb_max))
    if steps % 2:
        steps += 1              # even step count -> balanced megacore split on v7x
    return _round_up(_cdiv(batch, steps), 8)


def mlp_kernel(x_ref, w1_ref, b1_ref, w2_ref, b2_ref, w3_ref, b3_ref,
               w4_ref, b4_ref, o_ref):
    # x tile: (TB, 22) streamed per grid step (cast to bf16 on the VPU, free);
    # weights bf16, resident in VMEM. All matmuls hit the MXU with f32
    # accumulation; bias-add/ReLU in f32, fused with the bf16 downcast so only
    # the bf16 copy of each (TB, 256) intermediate stays live between layers.
    h = jnp.dot(x_ref[...].astype(COMPUTE_DTYPE), w1_ref[...],
                preferred_element_type=jnp.float32)
    h = jnp.maximum(h + b1_ref[...], 0.0).astype(COMPUTE_DTYPE)

    h = jnp.dot(h, w2_ref[...], preferred_element_type=jnp.float32)
    h = jnp.maximum(h + b2_ref[...], 0.0).astype(COMPUTE_DTYPE)

    h = jnp.dot(h, w3_ref[...], preferred_element_type=jnp.float32)
    h = jnp.maximum(h + b3_ref[...], 0.0).astype(COMPUTE_DTYPE)

    out = jnp.dot(h, w4_ref[...], preferred_element_type=jnp.float32)
    o_ref[...] = (out + b4_ref[...]).astype(o_ref.dtype)


def init_params(key):
    """Mimics torch.nn.Linear default init (U[-1/sqrt(fan_in), 1/sqrt(fan_in)]).
    Weights stored transposed as (in, out) so the kernel computes x @ W + b."""
    dims = [INPUT_DIM] + [NUM_UNITS] * (NUM_LAYERS - 1) + [OUTPUT_DIM]
    params = []
    for i in range(NUM_LAYERS):
        fan_in, fan_out = dims[i], dims[i + 1]
        key, kw, kb = jax.random.split(key, 3)
        bound = 1.0 / np.sqrt(fan_in)
        w = jax.random.uniform(kw, (fan_in, fan_out), jnp.float32, -bound, bound)
        b = jax.random.uniform(kb, (fan_out,), jnp.float32, -bound, bound)
        params.append((w, b))
    return params


def pad_params(params):
    """Zero-pad feature axes to lane multiples (done once, kept in HBM) and cast
    weights to the bf16 MXU operand dtype. Biases stay f32 (added post-accumulate).
    Zero-padded columns guarantee output columns >= OUTPUT_DIM are exactly zero."""
    in_dims = [INPUT_DIM, HIDDEN_PAD, HIDDEN_PAD, HIDDEN_PAD]
    out_dims = [HIDDEN_PAD, HIDDEN_PAD, HIDDEN_PAD, OUT_PAD]
    padded = []
    for (w, b), kp, npad in zip(params, in_dims, out_dims):
        k, n = w.shape
        wp = jnp.zeros((kp, npad), COMPUTE_DTYPE)
        wp = wp.at[:k, :n].set(w.astype(COMPUTE_DTYPE))
        bp = jnp.zeros((1, npad), jnp.float32)
        bp = bp.at[0, :n].set(b.astype(jnp.float32))
        padded.append((wp, bp))
    return padded


@functools.partial(jax.jit, static_argnames=("tb_max",))
def mlp_forward(x, padded_params, *, tb_max=2048):
    """x: (batch, 22), any float dtype.  padded_params: output of pad_params.

    Returns the padded layout (batch, OUT_PAD=128) in bf16:
      * columns >= OUTPUT_DIM (14) are exactly zero
      * no extra rows (ragged last tile is masked inside the kernel)
    Consumers that need the compact view slice [:, :OUTPUT_DIM] themselves
    (keeping the slice out of this wrapper avoids an extra full HBM pass).
    """
    batch = x.shape[0]
    tb = _pick_tb(batch, tb_max)
    grid = (_cdiv(batch, tb),)

    flat_args = [x]
    in_specs = [pl.BlockSpec((tb, INPUT_DIM), lambda i: (i, 0))]
    for w, b in padded_params:
        flat_args.extend([w, b])
        # Constant index_map -> weights/biases fetched once, resident in VMEM.
        in_specs.append(pl.BlockSpec(w.shape, lambda i: (0, 0)))
        in_specs.append(pl.BlockSpec(b.shape, lambda i: (0, 0)))

    return pl.pallas_call(
        mlp_kernel,
        out_shape=jax.ShapeDtypeStruct((batch, OUT_PAD), OUT_DTYPE),
        grid=grid,
        in_specs=in_specs,
        out_specs=pl.BlockSpec((tb, OUT_PAD), lambda i: (i, 0)),
        compiler_params=pltpu.CompilerParams(
            dimension_semantics=("parallel",),       # megacore sharding on v7x
            vmem_limit_bytes=48 * 1024 * 1024,       # headroom for tb<=2048 (v5e default is 16 MiB)
        ),
    )(*flat_args)


def reference_forward(x, params):
    """Pure-JAX reference emulating bf16 MXU operands with f32 accumulation."""
    h = x.astype(jnp.float32)
    for i, (w, b) in enumerate(params):
        hb = h.astype(jnp.bfloat16).astype(jnp.float32)
        wb = w.astype(jnp.bfloat16).astype(jnp.float32)
        h = hb @ wb + b.reshape(1, -1)
        if i < len(params) - 1:
            h = jnp.maximum(h, 0.0)
    return h


if __name__ == "__main__":
    key = jax.random.PRNGKey(0)
    params = init_params(key)
    padded_params = pad_params(params)

    # batch=300: single ragged tile (tb=304, 4 masked rows).
    # batch=1536: 2-step "parallel" grid (tb=768) -> exercises the megacore path.
    for batch in (300, 1536):
        key, kx = jax.random.split(key)
        x = jax.random.normal(kx, (batch, INPUT_DIM), jnp.float32)

        out = jax.block_until_ready(mlp_forward(x, padded_params))

        # Consumer-side view of the padded layout (cols >= 14 are exactly zero).
        y = np.asarray(out[:, :OUTPUT_DIM], dtype=np.float32)
        ref = np.asarray(reference_forward(x, params))
        np.testing.assert_allclose(y, ref, rtol=2e-2, atol=2e-2)

        pad_cols = np.asarray(out[:, OUTPUT_DIM:], dtype=np.float32)
        np.testing.assert_array_equal(pad_cols, np.zeros_like(pad_cols))

    print("KERNEL_OK")
</pallas_src>

<mosaic_0001>
module attributes {stable_mosaic.version = 11 : i64} {
  func.func @mlp_kernel(%arg0: i32, %arg1: memref<304x22xf32, #tpu.memory_space<vmem>>, %arg2: memref<22x256xbf16, #tpu.memory_space<vmem>>, %arg3: memref<1x256xf32, #tpu.memory_space<vmem>>, %arg4: memref<256x256xbf16, #tpu.memory_space<vmem>>, %arg5: memref<1x256xf32, #tpu.memory_space<vmem>>, %arg6: memref<256x256xbf16, #tpu.memory_space<vmem>>, %arg7: memref<1x256xf32, #tpu.memory_space<vmem>>, %arg8: memref<256x128xbf16, #tpu.memory_space<vmem>>, %arg9: memref<1x128xf32, #tpu.memory_space<vmem>>, %arg10: memref<304x128xbf16, #tpu.memory_space<vmem>>) attributes {dimension_semantics = [#tpu.dimension_semantics<parallel>], iteration_bounds = array<i64: 1>, scalar_prefetch = 0 : i64, scratch_operands = 0 : i64, tpu.core_type = #tpu.core_type<tc>, window_params = [{transform_indices = @transform_0, window_bounds = array<i64: 304, 22>}, {pipeline_mode = #tpu.pipeline_mode<synchronous>, transform_indices = @transform_1, window_bounds = array<i64: 22, 256>}, {pipeline_mode = #tpu.pipeline_mode<synchronous>, transform_indices = @transform_2, window_bounds = array<i64: 1, 256>}, {pipeline_mode = #tpu.pipeline_mode<synchronous>, transform_indices = @transform_3, window_bounds = array<i64: 256, 256>}, {pipeline_mode = #tpu.pipeline_mode<synchronous>, transform_indices = @transform_4, window_bounds = array<i64: 1, 256>}, {pipeline_mode = #tpu.pipeline_mode<synchronous>, transform_indices = @transform_5, window_bounds = array<i64: 256, 256>}, {pipeline_mode = #tpu.pipeline_mode<synchronous>, transform_indices = @transform_6, window_bounds = array<i64: 1, 256>}, {pipeline_mode = #tpu.pipeline_mode<synchronous>, transform_indices = @transform_7, window_bounds = array<i64: 256, 128>}, {pipeline_mode = #tpu.pipeline_mode<synchronous>, transform_indices = @transform_8, window_bounds = array<i64: 1, 128>}, {transform_indices = @transform_9, window_bounds = array<i64: 304, 128>}]} {
    %c0 = arith.constant 0 : index
    %c0_0 = arith.constant 0 : index
    %0 = vector.load %arg1[%c0, %c0_0] : memref<304x22xf32, #tpu.memory_space<vmem>>, vector<304x22xf32>
    %1 = arith.truncf %0 : vector<304x22xf32> to vector<304x22xbf16>
    %c0_1 = arith.constant 0 : index
    %c0_2 = arith.constant 0 : index
    %2 = vector.load %arg2[%c0_1, %c0_2] : memref<22x256xbf16, #tpu.memory_space<vmem>>, vector<22x256xbf16>
    %cst = arith.constant dense<0.000000e+00> : vector<304x256xf32>
    %3 = tpu.matmul %1, %2, %cst {dimension_numbers = #tpu.dot_dimension_numbers<[1], [0], [0], [1], [0, 0, 1, 1], [], []>} : vector<304x22xbf16>, vector<22x256xbf16>, vector<304x256xf32> -> vector<304x256xf32>
    %c0_3 = arith.constant 0 : index
    %c0_4 = arith.constant 0 : index
    %4 = vector.load %arg3[%c0_3, %c0_4] : memref<1x256xf32, #tpu.memory_space<vmem>>, vector<1x256xf32>
    %5 = vector.broadcast %4 : vector<1x256xf32> to vector<304x256xf32>
    %6 = arith.addf %3, %5 : vector<304x256xf32>
    %cst_5 = arith.constant 0.000000e+00 : f32
    %7 = vector.broadcast %cst_5 : f32 to vector<304x256xf32>
    %8 = arith.maximumf %6, %7 : vector<304x256xf32>
    %9 = arith.truncf %8 : vector<304x256xf32> to vector<304x256xbf16>
    %c0_6 = arith.constant 0 : index
    %c0_7 = arith.constant 0 : index
    %10 = vector.load %arg4[%c0_6, %c0_7] : memref<256x256xbf16, #tpu.memory_space<vmem>>, vector<256x256xbf16>
    %cst_8 = arith.constant dense<0.000000e+00> : vector<304x256xf32>
    %11 = tpu.matmul %9, %10, %cst_8 {dimension_numbers = #tpu.dot_dimension_numbers<[1], [0], [0], [1], [0, 0, 1, 1], [], []>} : vector<304x256xbf16>, vector<256x256xbf16>, vector<304x256xf32> -> vector<304x256xf32>
    %c0_9 = arith.constant 0 : index
    %c0_10 = arith.constant 0 : index
    %12 = vector.load %arg5[%c0_9, %c0_10] : memref<1x256xf32, #tpu.memory_space<vmem>>, vector<1x256xf32>
    %13 = vector.broadcast %12 : vector<1x256xf32> to vector<304x256xf32>
    %14 = arith.addf %11, %13 : vector<304x256xf32>
    %cst_11 = arith.constant 0.000000e+00 : f32
    %15 = vector.broadcast %cst_11 : f32 to vector<304x256xf32>
    %16 = arith.maximumf %14, %15 : vector<304x256xf32>
    %17 = arith.truncf %16 : vector<304x256xf32> to vector<304x256xbf16>
    %c0_12 = arith.constant 0 : index
    %c0_13 = arith.constant 0 : index
    %18 = vector.load %arg6[%c0_12, %c0_13] : memref<256x256xbf16, #tpu.memory_space<vmem>>, vector<256x256xbf16>
    %cst_14 = arith.constant dense<0.000000e+00> : vector<304x256xf32>
    %19 = tpu.matmul %17, %18, %cst_14 {dimension_numbers = #tpu.dot_dimension_numbers<[1], [0], [0], [1], [0, 0, 1, 1], [], []>} : vector<304x256xbf16>, vector<256x256xbf16>, vector<304x256xf32> -> vector<304x256xf32>
    %c0_15 = arith.constant 0 : index
    %c0_16 = arith.constant 0 : index
    %20 = vector.load %arg7[%c0_15, %c0_16] : memref<1x256xf32, #tpu.memory_space<vmem>>, vector<1x256xf32>
    %21 = vector.broadcast %20 : vector<1x256xf32> to vector<304x256xf32>
    %22 = arith.addf %19, %21 : vector<304x256xf32>
    %cst_17 = arith.constant 0.000000e+00 : f32
    %23 = vector.broadcast %cst_17 : f32 to vector<304x256xf32>
    %24 = arith.maximumf %22, %23 : vector<304x256xf32>
    %25 = arith.truncf %24 : vector<304x256xf32> to vector<304x256xbf16>
    %c0_18 = arith.constant 0 : index
    %c0_19 = arith.constant 0 : index
    %26 = vector.load %arg8[%c0_18, %c0_19] : memref<256x128xbf16, #tpu.memory_space<vmem>>, vector<256x128xbf16>
    %cst_20 = arith.constant dense<0.000000e+00> : vector<304x128xf32>
    %27 = tpu.matmul %25, %26, %cst_20 {dimension_numbers = #tpu.dot_dimension_numbers<[1], [0], [0], [1], [0, 0, 1, 1], [], []>} : vector<304x256xbf16>, vector<256x128xbf16>, vector<304x128xf32> -> vector<304x128xf32>
    %c0_21 = arith.constant 0 : index
    %c0_22 = arith.constant 0 : index
    %28 = vector.load %arg9[%c0_21, %c0_22] : memref<1x128xf32, #tpu.memory_space<vmem>>, vector<1x128xf32>
    %29 = vector.broadcast %28 : vector<1x128xf32> to vector<304x128xf32>
    %30 = arith.addf %27, %29 : vector<304x128xf32>
    %31 = arith.truncf %30 : vector<304x128xf32> to vector<304x128xbf16>
    %c0_23 = arith.constant 0 : index
    %c0_24 = arith.constant 0 : index
    %32 = vector.load %arg10[%c0_23, %c0_24] : memref<304x128xbf16, #tpu.memory_space<vmem>>, vector<304x128xbf16>
    tpu.vector_store %arg10[%c0_23, %c0_24], %31 {strides = array<i32>} : memref<304x128xbf16, #tpu.memory_space<vmem>>, vector<304x128xbf16>,
    return
  }
  func.func @transform_0(%arg0: i32) -> (i32, i32) {
    %c0_i32 = arith.constant 0 : i32
    %c0_i32_0 = arith.constant 0 : i32
    return %arg0, %c0_i32 : i32, i32
  }
  func.func @transform_1(%arg0: i32) -> (i32, i32) {
    %c0_i32 = arith.constant 0 : i32
    %c0_i32_0 = arith.constant 0 : i32
    %c0_i32_1 = arith.constant 0 : i32
    return %c0_i32, %c0_i32_0 : i32, i32
  }
  func.func @transform_2(%arg0: i32) -> (i32, i32) {
    %c0_i32 = arith.constant 0 : i32
    %c0_i32_0 = arith.constant 0 : i32
    %c0_i32_1 = arith.constant 0 : i32
    return %c0_i32, %c0_i32_0 : i32, i32
  }
  func.func @transform_3(%arg0: i32) -> (i32, i32) {
    %c0_i32 = arith.constant 0 : i32
    %c0_i32_0 = arith.constant 0 : i32
    %c0_i32_1 = arith.constant 0 : i32
    return %c0_i32, %c0_i32_0 : i32, i32
  }
  func.func @transform_4(%arg0: i32) -> (i32, i32) {
    %c0_i32 = arith.constant 0 : i32
    %c0_i32_0 = arith.constant 0 : i32
    %c0_i32_1 = arith.constant 0 : i32
    return %c0_i32, %c0_i32_0 : i32, i32
  }
  func.func @transform_5(%arg0: i32) -> (i32, i32) {
    %c0_i32 = arith.constant 0 : i32
    %c0_i32_0 = arith.constant 0 : i32
    %c0_i32_1 = arith.constant 0 : i32
    return %c0_i32, %c0_i32_0 : i32, i32
  }
  func.func @transform_6(%arg0: i32) -> (i32, i32) {
    %c0_i32 = arith.constant 0 : i32
    %c0_i32_0 = arith.constant 0 : i32
    %c0_i32_1 = arith.constant 0 : i32
    return %c0_i32, %c0_i32_0 : i32, i32
  }
  func.func @transform_7(%arg0: i32) -> (i32, i32) {
    %c0_i32 = arith.constant 0 : i32
    %c0_i32_0 = arith.constant 0 : i32
    %c0_i32_1 = arith.constant 0 : i32
    return %c0_i32, %c0_i32_0 : i32, i32
  }
  func.func @transform_8(%arg0: i32) -> (i32, i32) {
    %c0_i32 = arith.constant 0 : i32
    %c0_i32_0 = arith.constant 0 : i32
    %c0_i32_1 = arith.constant 0 : i32
    return %c0_i32, %c0_i32_0 : i32, i32
  }
  func.func @transform_9(%arg0: i32) -> (i32, i32) {
    %c0_i32 = arith.constant 0 : i32
    %c0_i32_0 = arith.constant 0 : i32
    return %arg0, %c0_i32 : i32, i32
  }
}

</mosaic_0001>

<bundles_post_ra>
// kernel: mlp_forward.1
= control target key start
LH: loop header
LB: loop body
LE: loop exit
PB: predicated region body
PF: predicated region fallthrough
CT: control target
= control target key end

     0   :  { %14 = vsyncpa [#allocation3], 0  ;;  %s3486_s0 = inlined_call_operand.vmem [shape: f32[300,22], index: 0, kind: input, shape index: {}]   ;;  %s3487_s1 = inlined_call_operand.hbm [shape: bf16[22,256], index: 1, kind: input, shape index: {}]   ;;  %s3488_s2 = inlined_call_operand.vmem [shape: f32[1,256], index: 2, kind: input, shape index: {}]   ;;  %s3489_s3 = inlined_call_operand.vmem [shape: bf16[256,256], index: 3, kind: input, shape index: {}]   ;;  %s3490_s4 = inlined_call_operand.hbm [shape: f32[1,256], index: 4, kind: input, shape index: {}]   ;;  %s3491_s5 = inlined_call_operand.hbm [shape: bf16[256,256], index: 5, kind: input, shape index: {}]   ;;  %s3492_s6 = inlined_call_operand.hbm [shape: f32[1,256], index: 6, kind: input, shape index: {}]   ;;  %s3493_s7 = inlined_call_operand.vmem [shape: bf16[256,128], index: 7, kind: input, shape index: {}]   ;;  %s3494_s8 = inlined_call_operand.hbm [shape: f32[1,128], index: 8, kind: input, shape index: {}]   ;;  %s3495_s9 = inlined_call_operand.hbm [shape: bf16[300,128], index: 9, kind: output, shape index: {}]  }
   0x1   :  { %15 = vsyncpa [#allocation6], 0 }
   0x2   :  { %16 = vsyncpa [#allocation9], 0 }
   0x3   :  { %17 = vsyncpa [#allocation4], 0  ;;  %s2778_s30 = smov [#allocation5]   ;;  %s2779_s11 = smov [#allocation8]  }
   0x4   :  { %s42_s10 = sshll.u32 %s2778_s30, 4  ;;  %s64_s12 = sshll.u32 %s2779_s11, 4  ;;  %s43_s10 = int_to_ptr.vmem [resolvable:$true] %s42_s10  ;;  %s65_s12 = int_to_ptr.vmem [resolvable:$true] %s64_s12 }
   0x5   :  { %s2658_s13 = scalar_lea.vmem %s43_s10, 32  ;;  %p2663_p1 = scmp.lt.s32.totalorder %s43_s10, %s43_s10 }
   0x6   :  { %p2659_p0 = scmp.ne.s32.totalorder %s43_s10, %s2658_s13  ;;  %p2664_p2 = scmp.lt.s32.totalorder %s2658_s13, %s2658_s13 }
   0x8   :  { %p2665_p3 = por %p2664_p2, %p2663_p1 }
   0xa   :  { %p2666_p4 = pnand %p2665_p3, %p2659_p0 }
   0xc   :  { %2669 = shalt.err (!%p2666_p4)
}
   0xd   :  { %45 = dma.hbm_to_vmem [thread:$0]  %s3490_s4, 32, %s43_s10, [#allocation6]  }
   0xe   :  { %s2678_s16 = scalar_lea.vmem %s65_s12, 32  ;;  %p2683_p6 = scmp.lt.s32.totalorder %s65_s12, %s65_s12 }
   0xf   :  { %p2679_p5 = scmp.ne.s32.totalorder %s65_s12, %s2678_s16  ;;  %p2684_p7 = scmp.lt.s32.totalorder %s2678_s16, %s2678_s16 }
  0x11   :  { %p2685_p8 = por %p2684_p7, %p2683_p6 }
  0x13   :  { %p2686_p9 = pnand %p2685_p8, %p2679_p5 }
  0x15   :  { %2689 = shalt.err (!%p2686_p9)
}
  0x16   :  { %67 = dma.hbm_to_vmem [thread:$0]  %s3492_s6, 32, %s65_s12, [#allocation9]  }
  0x17   :  { %s2780_s19 = smov [#allocation2]  }
  0x18   :  { %s25_s20 = sshll.u32 %s2780_s19, 4  ;;  %s26_s20 = int_to_ptr.vmem [resolvable:$true] %s25_s20 }
  0x19   :  { %s2698_s21 = scalar_lea.vmem %s26_s20, 384  ;;  %p2703_p11 = scmp.lt.s32.totalorder %s26_s20, %s26_s20 }
  0x1a   :  { %p2699_p10 = scmp.ne.s32.totalorder %s26_s20, %s2698_s21  ;;  %p2704_p12 = scmp.lt.s32.totalorder %s2698_s21, %s2698_s21 }
  0x1c   :  { %p2705_p13 = por %p2704_p12, %p2703_p11 }
  0x1e   :  { %p2706_p0 = pnand %p2705_p13, %p2699_p10 }
  0x20   :  { %2709 = shalt.err (!%p2706_p0)
}
  0x21   :  { %s2781_s4 = smov 128   ;;  %s2782_s22 = smov 8  }
  0x22   :  { %31 = dma.hbm_to_vmem [thread:$0]  %s3487_s1, 384, %s26_s20, [#allocation3], %s2781_s4, %s2781_s4, %s2782_s22  }
  0x23   :  { %s2783_s25 = smov [#allocation7]   ;;  %s2784_s6 = smov [#allocation10]  }
  0x24   :  { %s51_s26 = sshll.u32 %s2783_s25, 4  ;;  %s76_s27 = sshll.u32 %s2784_s6, 4  ;;  %s52_s26 = int_to_ptr.vmem [resolvable:$true] %s51_s26  ;;  %s77_s27 = int_to_ptr.vmem [resolvable:$true] %s76_s27 }
  0x25   :  { %s2718_s28 = scalar_lea.vmem %s52_s26, 4096  ;;  %p2723_p2 = scmp.lt.s32.totalorder %s52_s26, %s52_s26 }
  0x26   :  { %p2719_p1 = scmp.ne.s32.totalorder %s52_s26, %s2718_s28  ;;  %p2724_p3 = scmp.lt.s32.totalorder %s2718_s28, %s2718_s28 }
  0x28   :  { %p2725_p4 = por %p2724_p3, %p2723_p2 }
  0x2a   :  { %p2726_p5 = pnand %p2725_p4, %p2719_p1 }
  0x2c   :  { %2729 = shalt.err (!%p2726_p5)
}
  0x2d   :  { %57 = dma.hbm_to_vmem [thread:$0]  %s3491_s5, 4096, %s52_s26, [#allocation6], %s2781_s4, %s2781_s4, %s2782_s22  }
  0x2e   :  { %s2738_s10 = scalar_lea.vmem %s77_s27, 16  ;;  %s2742_s1 = scalar_lea.vmem %s77_s27, 32 }
  0x2f   :  { %p2739_p6 = scmp.ne.s32.totalorder %s77_s27, %s2738_s10  ;;  %p2743_p7 = scmp.lt.s32.totalorder %s77_s27, %s77_s27 }
  0x30   :  { %p2744_p8 = scmp.lt.s32.totalorder %s2742_s1, %s2738_s10 }
  0x32   :  { %p2745_p9 = por %p2744_p8, %p2743_p7 }
  0x34   :  { %p2746_p10 = pnand %p2745_p9, %p2739_p6 }
  0x36   :  { %2749 = shalt.err (!%p2746_p10)
}
  0x37   :  { %79 = dma.hbm_to_vmem [thread:$0]  %s3494_s8, 16, %s77_s27, [#allocation9]  }
  0x38   :  { %2770 = dma.done.wait [#allocation3], 384  }
  0x39   :  { %2771 = vsyncadd [#allocation3], 4294966912 }
  0x3a   :  { %2772 = dma.done.wait [#allocation6], 4128  }
  0x3b   :  { %2773 = vsyncadd [#allocation6], 4294963168 }
  0x3c   :  { %2774 = dma.done.wait [#allocation9], 48  }
  0x3d   :  { %2775 = vsyncadd [#allocation9], 4294967248  ;;  %v2785_v0 = vmov 0   ;;  %v155_v1 = vld [vmem:[#allocation2 + $0x10] sm:$0x77]  ;;  %vm241_vm0 = vcmask 1042432  }
  0x3e   :  { %280 = vmatprep.mubr.bf16.mxu0 %v2785_v0  ;;  %v2199_v2 = vcombine.high %v155_v1, %v155_v1  ;;  %v2198_v3 = vcombine.low %v155_v1, %v155_v1  ;;  %v2535_v4 = vld [vmem:[#allocation2 + $0x4] ss:$8 sps:$4 sm:$0xff]   ;;  %v2537_v6 = vld [vmem:[#allocation2] ss:$8 sps:$4 sm:$0xff]   ;;  %vm183_vm1 = vcmask 179200   ;;  %v98_v10 = vld [vmem:[%s3486_s0 + $0x10] sm:$0xff] }
  0x3f   :  { %v96_v7 = vld [vmem:[%s3486_s0] sm:$0xff]  ;;  %v97_v8 = vld [vmem:[%s3486_s0 + $0x8] sm:$0xff]  ;;  %v99_v11 = vld [vmem:[%s3486_s0 + $0x18] sm:$0xff] }
  0x40   :  { %2200 = vmatprep.subr.msk.bf16.mxu0 %vm241_vm0, %v2199_v2  ;;  %v243_v5 = vsel %vm241_vm0, %v2198_v3, 0  ;;  %v134_v9 = vpack.c.bf16 %v97_v8, %v96_v7  ;;  %v135_v12 = vpack.c.bf16 %v99_v11, %v98_v10  ;;  %v2538_v13 = vld [vmem:[%s3489_s3 + $0x74] ss:$8 sps:$4 sm:$0xff]   ;;  %v100_v14 = vld [vmem:[%s3486_s0 + $0x20] sm:$0xff]  ;;  %v101_v15 = vld [vmem:[%s3486_s0 + $0x28] sm:$0xff] }
  0x41   :  { %261 = vmatpush1.bf16.msra.mxu0 %v243_v5  ;;  %v2540_v16 = vld [vmem:[%s3489_s3 + $0x70] ss:$8 sps:$4 sm:$0xff]   ;;  %789 = vmatprep.subr.bf16.mxu1 %v2538_v13  ;;  %v136_v17 = vpack.c.bf16 %v101_v15, %v100_v14  ;;  %v2541_v18 = vld [vmem:[%s3489_s3 + $0x64] ss:$8 sps:$4 sm:$0xff]   ;;  %v2543_v19 = vld [vmem:[%s3489_s3 + $0x60] ss:$8 sps:$4 sm:$0xff]  }
  0x42   :  { %262 = vmatprep.subr.bf16.mxu0 %v2535_v4  ;;  %790 = vmatpush1.bf16.msra.mxu1 %v2540_v16  ;;  %v2544_v20 = vld [vmem:[%s3489_s3 + $0x54] ss:$8 sps:$4 sm:$0xff]   ;;  %v2546_v23 = vld [vmem:[%s3489_s3 + $0x50] ss:$8 sps:$4 sm:$0xff]   ;;  %v2547_v25 = vld [vmem:[%s3489_s3 + $0x44] ss:$8 sps:$4 sm:$0xff]  }
  0x43   :  { %v102_v21 = vld [vmem:[%s3486_s0 + $0x30] sm:$0xff]  ;;  %v103_v22 = vld [vmem:[%s3486_s0 + $0x38] sm:$0xff]  ;;  %791 = vmatprep.subr.bf16.mxu1 %v2541_v18  ;;  %v104_v26 = vld [vmem:[%s3486_s0 + $0x40] sm:$0xff] }
  0x44   :  { %v137_v24 = vpack.c.bf16 %v103_v22, %v102_v21  ;;  %v105_v27 = vld [vmem:[%s3486_s0 + $0x48] sm:$0xff]  ;;  %v2550_v29 = vld [vmem:[%s3489_s3 + $0x34] ss:$8 sps:$4 sm:$0xff]   ;;  %v2552_v30 = vld [vmem:[%s3489_s3 + $0x30] ss:$8 sps:$4 sm:$0xff]  }
  0x45   :  { %263 = vmatpush1.bf16.msra.mxu0 %v2537_v6  ;;  %v2549_v28 = vld [vmem:[%s3489_s3 + $0x40] ss:$8 sps:$4 sm:$0xff]   ;;  %v2553_v31 = vld [vmem:[%s3489_s3 + $0x24] ss:$8 sps:$4 sm:$0xff]   ;;  %v138_v32 = vpack.c.bf16 %v105_v27, %v104_v26  ;;  %v2556_v34 = vld [vmem:[%s3489_s3 + $0x14] ss:$8 sps:$4 sm:$0xff]  }
  0x46   :  { %792 = vmatpush1.bf16.msra.mxu1 %v2543_v19  ;;  %v2555_v33 = vld [vmem:[%s3489_s3 + $0x20] ss:$8 sps:$4 sm:$0xff]   ;;  %v106_v35 = vld [vmem:[%s3486_s0 + $0x50] sm:$0xff]  ;;  %v107_v36 = vld [vmem:[%s3486_s0 + $0x58] sm:$0xff] }
  0x47   :  { %793 = vmatprep.subr.bf16.mxu1 %v2544_v20  ;;  %v2558_v37 = vld [vmem:[%s3489_s3 + $0x10] ss:$8 sps:$4 sm:$0xff]   ;;  %v2559_v38 = vld [vmem:[%s3489_s3 + $0x4] ss:$8 sps:$4 sm:$0xff]   ;;  %v139_v39 = vpack.c.bf16 %v107_v36, %v106_v35  ;;  %v2561_v40 = vld [vmem:[%s3489_s3] ss:$8 sps:$4 sm:$0xff]  }
  0x48   :  { %2201 = vmatmul.mubr.msk.bf16.vlgmr.msra.gmra.mxu0 %vm183_vm1, %v134_v9  ;;  %v2562_v41 = vld [vmem:[%s3489_s3 + $0xf4] ss:$8 sps:$4 sm:$0xff]   ;;  %v108_v42 = vld [vmem:[%s3486_s0 + $0x60] sm:$0xff]  ;;  %v109_v43 = vld [vmem:[%s3486_s0 + $0x68] sm:$0xff] }
  0x49   :  { %290 = vmatprep.mubr.bf16.mxu0 %v2785_v0  ;;  %v2564_v44 = vld [vmem:[%s3489_s3 + $0xf0] ss:$8 sps:$4 sm:$0xff]   ;;  %v140_v45 = vpack.c.bf16 %v109_v43, %v108_v42  ;;  %v2565_v46 = vld [vmem:[%s3489_s3 + $0xe4] ss:$8 sps:$4 sm:$0xff]   ;;  %v2567_v47 = vld [vmem:[%s3489_s3 + $0xe0] ss:$8 sps:$4 sm:$0xff]  }
  0x4a   :  { %794 = vmatpush1.bf16.msra.mxu1 %v2546_v23  ;;  %v2568_v48 = vld [vmem:[%s3489_s3 + $0xd4] ss:$8 sps:$4 sm:$0xff]   ;;  %v2570_v51 = vld [vmem:[%s3489_s3 + $0xd0] ss:$8 sps:$4 sm:$0xff]   ;;  %v2571_v53 = vld [vmem:[%s3489_s3 + $0xc4] ss:$8 sps:$4 sm:$0xff]  }
  0x4b   :  { %795 = vmatprep.subr.bf16.mxu1 %v2547_v25  ;;  %v110_v49 = vld [vmem:[%s3486_s0 + $0x70] sm:$0xff]  ;;  %v111_v50 = vld [vmem:[%s3486_s0 + $0x78] sm:$0xff]  ;;  %v2573_v54 = vld [vmem:[%s3489_s3 + $0xc0] ss:$8 sps:$4 sm:$0xff]  }
  0x4c   :  { %v141_v52 = vpack.c.bf16 %v111_v50, %v110_v49  ;;  %v2574_v55 = vld [vmem:[%s3489_s3 + $0xb4] ss:$8 sps:$4 sm:$0xff]   ;;  %v112_v56 = vld [vmem:[%s3486_s0 + $0x80] sm:$0xff]  ;;  %v113_v57 = vld [vmem:[%s3486_s0 + $0x88] sm:$0xff] }
  0x4d   :  { %v2576_v58 = vld [vmem:[%s3489_s3 + $0xb0] ss:$8 sps:$4 sm:$0xff]   ;;  %v142_v59 = vpack.c.bf16 %v113_v57, %v112_v56  ;;  %v2577_v60 = vld [vmem:[%s3489_s3 + $0xa4] ss:$8 sps:$4 sm:$0xff]   ;;  %v2579_v63 = vld [vmem:[%s3489_s3 + $0xa0] ss:$8 sps:$4 sm:$0xff]  }
  0x4e   :  { %796 = vmatpush1.bf16.msra.mxu1 %v2549_v28  ;;  %v114_v61 = vld [vmem:[%s3486_s0 + $0x90] sm:$0xff]  ;;  %v115_v62 = vld [vmem:[%s3486_s0 + $0x98] sm:$0xff]  ;;  %v2583_v4 = vld [vmem:[%s3489_s3 + $0x84] ss:$8 sps:$4 sm:$0xff]  }
  0x4f   :  { %797 = vmatprep.subr.bf16.mxu1 %v2550_v29  ;;  %v143_v1 = vpack.c.bf16 %v115_v62, %v114_v61  ;;  %v2580_v2 = vld [vmem:[%s3489_s3 + $0x94] ss:$8 sps:$4 sm:$0xff]   ;;  %v2582_v3 = vld [vmem:[%s3489_s3 + $0x90] ss:$8 sps:$4 sm:$0xff]   ;;  %v116_v5 = vld [vmem:[%s3486_s0 + $0xa0] sm:$0xff] }
  0x50   :  { %2202 = vmatmul.mubr.msk.bf16.gmra.mxu0 %vm183_vm1, %v135_v12  ;;  %v117_v6 = vld [vmem:[%s3486_s0 + $0xa8] sm:$0xff]  ;;  %v118_v9 = vld [vmem:[%s3486_s0 + $0xb0] sm:$0xff]  ;;  %v119_v10 = vld [vmem:[%s3486_s0 + $0xb8] sm:$0xff] }
  0x51   :  { %300 = vmatprep.mubr.bf16.mxu0 %v2785_v0  ;;  %v2585_v7 = vld [vmem:[%s3489_s3 + $0x80] ss:$8 sps:$4 sm:$0xff]   ;;  %v144_v8 = vpack.c.bf16 %v117_v6, %v116_v5  ;;  %v145_v11 = vpack.c.bf16 %v119_v10, %v118_v9  ;;  %v122_v15 = vld [vmem:[%s3486_s0 + $0xd0] sm:$0xff]  ;;  %v123_v16 = vld [vmem:[%s3486_s0 + $0xd8] sm:$0xff] }
  0x52   :  { %798 = vmatpush1.bf16.msra.mxu1 %v2552_v30  ;;  %v120_v12 = vld [vmem:[%s3486_s0 + $0xc0] sm:$0xff]  ;;  %v121_v13 = vld [vmem:[%s3486_s0 + $0xc8] sm:$0xff]  ;;  %v126_v21 = vld [vmem:[%s3486_s0 + $0xf0] sm:$0xff] }
  0x53   :  { %799 = vmatprep.subr.bf16.mxu1 %v2553_v31  ;;  %v146_v14 = vpack.c.bf16 %v121_v13, %v120_v12  ;;  %v124_v18 = vld [vmem:[%s3486_s0 + $0xe0] sm:$0xff]  ;;  %v125_v19 = vld [vmem:[%s3486_s0 + $0xe8] sm:$0xff]  ;;  %v127_v22 = vld [vmem:[%s3486_s0 + $0xf8] sm:$0xff] }
  0x54   :  { %v148_v20 = vpack.c.bf16 %v125_v19, %v124_v18  ;;  %v149_v23 = vpack.c.bf16 %v127_v22, %v126_v21  ;;  %v129_v25 = vld [vmem:[%s3486_s0 + $0x108] sm:$0xff]  ;;  %v130_v27 = vld [vmem:[%s3486_s0 + $0x110] sm:$0xff]  ;;  %v131_v28 = vld [vmem:[%s3486_s0 + $0x118] sm:$0xff] }
  0x55   :  { %v151_v29 = vpack.c.bf16 %v131_v28, %v130_v27  ;;  %v2586_v30 = vld [vmem:[#allocation7 + $0x70] ss:$8 sps:$4 sm:$0xff]   ;;  %v2588_v31 = vld [vmem:[#allocation7 + $0x74] ss:$8 sps:$4 sm:$0xff]   ;;  %v2589_v35 = vld [vmem:[#allocation7 + $0x60] ss:$8 sps:$4 sm:$0xff]  }
  0x56   :  { %800 = vmatpush1.bf16.msra.mxu1 %v2555_v33  ;;  %1330 = vmatprep.subr.bf16.mxu0 %v2588_v31  ;;  %v133_v33 = vld [vmem:[%s3486_s0 + $0x128] sm:$0xff]  ;;  %v2601_v43 = vld [vmem:[#allocation7 + $0x20] ss:$8 sps:$4 sm:$0xff]   ;;  %v156_v49 = vld [vmem:[%s3488_s2] sm:$0x3] }
  0x57   :  { %801 = vmatprep.subr.bf16.mxu1 %v2556_v34  ;;  %1331 = vmatpush1.bf16.msra.mxu0 %v2586_v30  ;;  %v2591_v36 = vld [vmem:[#allocation7 + $0x64] ss:$8 sps:$4 sm:$0xff]   ;;  %v2600_v42 = vld [vmem:[#allocation7 + $0x34] ss:$8 sps:$4 sm:$0xff]   ;;  %v2607_v6 = vld [vmem:[#allocation7] ss:$8 sps:$4 sm:$0xff]  }
  0x58   :  { %2203 = vmatmul.mubr.msk.bf16.gmra.mxu0 %vm183_vm1, %v136_v17  ;;  %v147_v17 = vpack.c.bf16 %v123_v16, %v122_v15  ;;  %1332 = vmatprep.subr.bf16.mxu0 %v2591_v36  ;;  %v2610_v22 = vld [vmem:[#allocation7 + $0xf0] ss:$8 sps:$4 sm:$0xff]  }
  0x59   :  { %310 = vmatprep.mubr.bf16.mxu0 %v2785_v0 }
  0x5a   :  { %802 = vmatpush1.bf16.msra.mxu1 %v2558_v37  ;;  %v2592_v37 = vld [vmem:[#allocation7 + $0x50] ss:$8 sps:$4 sm:$0xff]  }
  0x5b   :  { %803 = vmatprep.subr.bf16.mxu1 %v2559_v38  ;;  %1333 = vmatpush1.bf16.msra.mxu0 %v2589_v35  ;;  %v2594_v38 = vld [vmem:[#allocation7 + $0x54] ss:$8 sps:$4 sm:$0xff]  }
  0x5c   :  { %1334 = vmatprep.subr.bf16.mxu0 %v2594_v38  ;;  %v2613_v38 = vld [vmem:[#allocation7 + $0xe0] ss:$8 sps:$4 sm:$0xff]  }
  0x5e   :  { %804 = vmatpush1.bf16.msra.mxu1 %v2561_v40  ;;  %v2597_v40 = vld [vmem:[#allocation7 + $0x44] ss:$8 sps:$4 sm:$0xff]  }
  0x5f   :  { %805 = vmatprep.subr.bf16.mxu1 %v2562_v41  ;;  %1335 = vmatpush1.bf16.msra.mxu0 %v2592_v37  ;;  %v2598_v41 = vld [vmem:[#allocation7 + $0x30] ss:$8 sps:$4 sm:$0xff]  }
  0x60   :  { %2204 = vmatmul.mubr.msk.bf16.gmra.mxu0 %vm183_vm1, %v137_v24  ;;  %v128_v24 = vld [vmem:[%s3486_s0 + $0x100] sm:$0xff]  ;;  %1336 = vmatprep.subr.bf16.mxu0 %v2597_v40 }
  0x61   :  { %320 = vmatprep.mubr.bf16.mxu0 %v2785_v0  ;;  %v150_v26 = vpack.c.bf16 %v129_v25, %v128_v24 }
  0x62   :  { %806 = vmatpush2.bf16.msra.mxu1 %v2564_v44  ;;  %v2603_v44 = vld [vmem:[#allocation7 + $0x24] ss:$8 sps:$4 sm:$0xff]  }
  0x63   :  { %807 = vmatprep.subr.bf16.mxu1 %v2565_v46 }
  0x66   :  { %808 = vmatpush2.bf16.msra.mxu1 %v2567_v47 }
  0x67   :  { %809 = vmatprep.subr.bf16.mxu1 %v2568_v48 }
  0x68   :  { %2205 = vmatmul.mubr.msk.bf16.gmra.mxu0 %vm183_vm1, %v138_v32  ;;  %v132_v32 = vld [vmem:[%s3486_s0 + $0x120] sm:$0xff] }
  0x69   :  { %330 = vmatprep.mubr.bf16.mxu0 %v2785_v0  ;;  %v152_v34 = vpack.c.bf16 %v133_v33, %v132_v32 }
  0x6a   :  { %810 = vmatpush2.bf16.msra.mxu1 %v2570_v51 }
  0x6b   :  { %811 = vmatprep.subr.bf16.mxu1 %v2571_v53  ;;  %v2606_v53 = vld [vmem:[#allocation7 + $0x14] ss:$8 sps:$4 sm:$0xff]  }
  0x6e   :  { %812 = vmatpush2.bf16.msra.mxu1 %v2573_v54 }
  0x6f   :  { %813 = vmatprep.subr.bf16.mxu1 %v2574_v55 }
  0x70   :  { %2206 = vmatmul.mubr.msk.bf16.gmra.mxu0 %vm183_vm1, %v139_v39  ;;  %v2595_v39 = vld [vmem:[#allocation7 + $0x40] ss:$8 sps:$4 sm:$0xff]  }
  0x71   :  { %340 = vmatprep.mubr.bf16.mxu0 %v2785_v0  ;;  %1337 = vmatpush1.bf16.msra.mxu0 %v2595_v39  ;;  %v2615_v39 = vld [vmem:[#allocation7 + $0xe4] ss:$8 sps:$4 sm:$0xff]  }
  0x72   :  { %814 = vmatpush2.bf16.msra.mxu1 %v2576_v58  ;;  %1338 = vmatprep.subr.bf16.mxu0 %v2600_v42 }
  0x73   :  { %815 = vmatprep.subr.bf16.mxu1 %v2577_v60 }
  0x75   :  { %1339 = vmatpush1.bf16.msra.mxu0 %v2598_v41 }
  0x76   :  { %816 = vmatpush2.bf16.msra.mxu1 %v2579_v63  ;;  %1340 = vmatprep.subr.bf16.mxu0 %v2603_v44 }
  0x77   :  { %817 = vmatprep.subr.bf16.mxu1 %v2580_v2 }
  0x78   :  { %2207 = vmatmul.mubr.msk.bf16.gmra.mxu0 %vm183_vm1, %v140_v45  ;;  %v158_v45 = vlaneseq }
  0x79   :  { %350 = vmatprep.mubr.bf16.mxu0 %v2785_v0  ;;  %1341 = vmatpush1.bf16.msra.mxu0 %v2601_v43 }
  0x7a   :  { %818 = vmatpush2.bf16.msra.mxu1 %v2582_v3  ;;  %v159_v46 = vshrl.u32 %v158_v45, 7  ;;  %1342 = vmatprep.subr.bf16.mxu0 %v2606_v53 }
  0x7b   :  { %819 = vmatprep.subr.bf16.mxu1 %v2583_v4 }
  0x7c   :  { %v3103_v47 = vsub.s32 1, %v159_v46  ;;  %v3105_v48 = vsub.s32 0, %v159_v46  ;;  %v2616_v46 = vld [vmem:[#allocation7 + $0xd0] ss:$8 sps:$4 sm:$0xff]  }
  0x7e   :  { %820 = vmatpush2.bf16.msra.mxu1 %v2585_v7  ;;  %v3111_v51 = vrot.slane %v156_v49, %v3103_v47  ;;  %v3114_v54 = vrot.slane %v156_v49, %v3105_v48  ;;  %v2609_v7 = vld [vmem:[#allocation7 + $0x4] ss:$8 sps:$4 sm:$0xff]   ;;  %v2618_v49 = vld [vmem:[#allocation7 + $0xd4] ss:$8 sps:$4 sm:$0xff]  }
  0x7f   :  { %2490 = vmatprep.subr.bf16.mxu1 %v2785_v0 }
  0x80   :  { %2208 = vmatmul.mubr.msk.bf16.gmra.mxu0 %vm183_vm1, %v141_v52  ;;  %v2604_v52 = vld [vmem:[#allocation7 + $0x10] ss:$8 sps:$4 sm:$0xff]  }
  0x81   :  { %360 = vmatprep.mubr.bf16.mxu0 %v2785_v0  ;;  %1343 = vmatpush1.bf16.msra.mxu0 %v2604_v52  ;;  %v2621_v52 = vld [vmem:[#allocation7 + $0xc4] ss:$8 sps:$4 sm:$0xff]  }
  0x82   :  { %1344 = vmatprep.subr.bf16.mxu0 %v2609_v7 }
  0x85   :  { %1345 = vmatpush1.bf16.msra.mxu0 %v2607_v6  ;;  %v2622_v6 = vld [vmem:[#allocation7 + $0xb0] ss:$8 sps:$4 sm:$0xff]  }
  0x88   :  { %2209 = vmatmul.mubr.msk.bf16.gmra.mxu0 %vm183_vm1, %v142_v59 }
  0x89   :  { %370 = vmatprep.mubr.bf16.mxu0 %v2785_v0 }
  0x90   :  { %2210 = vmatmul.mubr.msk.bf16.gmra.mxu0 %vm183_vm1, %v143_v1 }
  0x91   :  { %380 = vmatprep.mubr.bf16.mxu0 %v2785_v0 }
  0x98   :  { %2211 = vmatmul.mubr.msk.bf16.gmra.mxu0 %vm183_vm1, %v144_v8 }
  0x99   :  { %390 = vmatprep.mubr.bf16.mxu0 %v2785_v0 }
  0xa0   :  { %2212 = vmatmul.mubr.msk.bf16.gmra.mxu0 %vm183_vm1, %v145_v11 }
  0xa1   :  { %400 = vmatprep.mubr.bf16.mxu0 %v2785_v0 }
  0xa8   :  { %2213 = vmatmul.mubr.msk.bf16.gmra.mxu0 %vm183_vm1, %v146_v14 }
  0xa9   :  { %410 = vmatprep.mubr.bf16.mxu0 %v2785_v0 }
  0xb0   :  { %2214 = vmatmul.mubr.msk.bf16.gmra.mxu0 %vm183_vm1, %v147_v17 }
  0xb1   :  { %420 = vmatprep.mubr.bf16.mxu0 %v2785_v0 }
  0xb8   :  { %2215 = vmatmul.mubr.msk.bf16.gmra.mxu0 %vm183_vm1, %v148_v20 }
  0xb9   :  { %430 = vmatprep.mubr.bf16.mxu0 %v2785_v0 }
  0xc0   :  { %2216 = vmatmul.mubr.msk.bf16.gmra.mxu0 %vm183_vm1, %v149_v23  ;;  %v2612_v23 = vld [vmem:[#allocation7 + $0xf4] ss:$8 sps:$4 sm:$0xff]  }
  0xc1   :  { %440 = vmatprep.mubr.bf16.mxu0 %v2785_v0  ;;  %1346 = vmatprep.subr.bf16.mxu0 %v2612_v23 }
  0xc2   :  { %1347 = vmatpush2.bf16.msra.mxu0 %v2610_v22 }
  0xc3   :  { %1348 = vmatprep.subr.bf16.mxu0 %v2615_v39 }
  0xc6   :  { %1349 = vmatpush2.bf16.msra.mxu0 %v2613_v38 }
  0xc7   :  { %1350 = vmatprep.subr.bf16.mxu0 %v2618_v49 }
  0xc8   :  { %2217 = vmatmul.mubr.msk.bf16.gmra.mxu0 %vm183_vm1, %v150_v26 }
  0xc9   :  { %450 = vmatprep.mubr.bf16.mxu0 %v2785_v0 }
  0xca   :  { %1351 = vmatpush2.bf16.msra.mxu0 %v2616_v46 }
  0xcb   :  { %1352 = vmatprep.subr.bf16.mxu0 %v2621_v52 }
  0xd0   :  { %2218 = vmatmul.mubr.msk.bf16.gmra.mxu0 %vm183_vm1, %v151_v29 }
  0xd1   :  { %460 = vmatprep.mubr.bf16.mxu0 %v2785_v0 }
  0xd8   :  { %2219 = vmatmul.mubr.msk.bf16.gmra.mxu0 %vm183_vm1, %v152_v34 }
 0x108   :  { %v282_v50 = vpop.f32.mrf.mxu0 }
 0x109   :  { %v283_v59 = vadd.f32 %v282_v50, %v3114_v54 }
 0x10a   :  { %v284_v55 = vpop.f32.mrf.mxu0 }
 0x10b   :  { %v285_v57 = vadd.f32 %v284_v55, %v3111_v51  ;;  %v471_v3 = vmax.f32 %v283_v59, 0.0 }
 0x10c   :  { %v286_v56 = vpop.f32.mrf.mxu0 }
 0x10d   :  { %v287_v58 = vadd.f32 %v286_v56, %v3114_v54  ;;  %v472_v1 = vmax.f32 %v285_v57, 0.0 }
 0x10e   :  { %v288_v60 = vpop.f32.mrf.mxu0 }
 0x10f   :  { %v289_v61 = vadd.f32 %v288_v60, %v3111_v51  ;;  %v473_v62 = vmax.f32 %v287_v58, 0.0  ;;  %v2619_v60 = vld [vmem:[#allocation7 + $0xc0] ss:$8 sps:$4 sm:$0xff]  }
 0x110   :  { %v292_v63 = vpop.f32.mrf.mxu0  ;;  %1353 = vmatpush2.bf16.msra.mxu0 %v2619_v60 }
 0x111   :  { %v474_v2 = vmax.f32 %v289_v61, 0.0  ;;  %v547_v8 = vpack.c.bf16 %v473_v62, %v471_v3  ;;  %v293_v12 = vadd.f32 %v292_v63, %v3114_v54  ;;  %v2624_v62 = vld [vmem:[#allocation7 + $0xb4] ss:$8 sps:$4 sm:$0xff]  }
 0x112   :  { %v294_v4 = vpop.f32.mrf.mxu0  ;;  %1354 = vmatprep.subr.bf16.mxu0 %v2624_v62 }
 0x113   :  { %v548_v5 = vpack.c.bf16 %v474_v2, %v472_v1  ;;  %v295_v10 = vadd.f32 %v294_v4, %v3111_v51  ;;  %v475_v19 = vmax.f32 %v293_v12, 0.0 }
 0x114   :  { %v296_v9 = vpop.f32.mrf.mxu0  ;;  %1355 = vmatpush2.bf16.msra.mxu0 %v2622_v6 }
 0x115   :  { %v297_v11 = vadd.f32 %v296_v9, %v3114_v54  ;;  %821 = vmatprep.mubr.bf16.mxu1 %v548_v5  ;;  %v476_v17 = vmax.f32 %v295_v10, 0.0 }
 0x116   :  { %v298_v13 = vpop.f32.mrf.mxu0  ;;  %822 = vmatmul.mubr.bf16.vlgmr.msra.gmra.mxu1 %v547_v8  ;;  %v2627_v8 = vld [vmem:[#allocation7 + $0xa4] ss:$8 sps:$4 sm:$0xff]  }
 0x117   :  { %v299_v14 = vadd.f32 %v298_v13, %v3111_v51  ;;  %v477_v15 = vmax.f32 %v297_v11, 0.0  ;;  %1356 = vmatprep.subr.bf16.mxu0 %v2627_v8 }
 0x118   :  { %v302_v16 = vpop.f32.mrf.mxu0 }
 0x119   :  { %v478_v18 = vmax.f32 %v299_v14, 0.0  ;;  %v549_v24 = vpack.c.bf16 %v477_v15, %v475_v19  ;;  %v303_v28 = vadd.f32 %v302_v16, %v3114_v54  ;;  %v2625_v15 = vld [vmem:[#allocation7 + $0xa0] ss:$8 sps:$4 sm:$0xff]  }
 0x11a   :  { %v304_v20 = vpop.f32.mrf.mxu0  ;;  %1357 = vmatpush2.bf16.msra.mxu0 %v2625_v15 }
 0x11b   :  { %v550_v21 = vpack.c.bf16 %v478_v18, %v476_v17  ;;  %v305_v26 = vadd.f32 %v304_v20, %v3111_v51  ;;  %v479_v35 = vmax.f32 %v303_v28, 0.0  ;;  %v2630_v17 = vld [vmem:[#allocation7 + $0x94] ss:$8 sps:$4 sm:$0xff]  }
 0x11c   :  { %v306_v25 = vpop.f32.mrf.mxu0  ;;  %1358 = vmatprep.subr.bf16.mxu0 %v2630_v17 }
 0x11d   :  { %v307_v27 = vadd.f32 %v306_v25, %v3114_v54  ;;  %831 = vmatprep.mubr.bf16.mxu1 %v550_v21  ;;  %v480_v33 = vmax.f32 %v305_v26, 0.0 }
 0x11e   :  { %v308_v29 = vpop.f32.mrf.mxu0  ;;  %832 = vmatmul.mubr.bf16.gmra.mxu1 %v549_v24  ;;  %v2628_v24 = vld [vmem:[#allocation7 + $0x90] ss:$8 sps:$4 sm:$0xff]  }
 0x11f   :  { %v309_v30 = vadd.f32 %v308_v29, %v3111_v51  ;;  %v481_v31 = vmax.f32 %v307_v27, 0.0  ;;  %1359 = vmatpush2.bf16.msra.mxu0 %v2628_v24 }
 0x120   :  { %v312_v32 = vpop.f32.mrf.mxu0 }
 0x121   :  { %v482_v34 = vmax.f32 %v309_v30, 0.0  ;;  %v551_v40 = vpack.c.bf16 %v481_v31, %v479_v35  ;;  %v313_v44 = vadd.f32 %v312_v32, %v3114_v54 }
 0x122   :  { %v314_v36 = vpop.f32.mrf.mxu0 }
 0x123   :  { %v552_v37 = vpack.c.bf16 %v482_v34, %v480_v33  ;;  %v315_v42 = vadd.f32 %v314_v36, %v3111_v51  ;;  %v483_v58 = vmax.f32 %v313_v44, 0.0 }
 0x124   :  { %v316_v41 = vpop.f32.mrf.mxu0 }
 0x125   :  { %v317_v43 = vadd.f32 %v316_v41, %v3114_v54  ;;  %841 = vmatprep.mubr.bf16.mxu1 %v552_v37  ;;  %v484_v56 = vmax.f32 %v315_v42, 0.0 }
 0x126   :  { %v318_v45 = vpop.f32.mrf.mxu0  ;;  %842 = vmatmul.mubr.bf16.gmra.mxu1 %v551_v40 }
 0x127   :  { %v319_v50 = vadd.f32 %v318_v45, %v3111_v51  ;;  %v485_v53 = vmax.f32 %v317_v43, 0.0 }
 0x128   :  { %v322_v55 = vpop.f32.mrf.mxu0 }
 0x129   :  { %v486_v57 = vmax.f32 %v319_v50, 0.0  ;;  %v553_v63 = vpack.c.bf16 %v485_v53, %v483_v58  ;;  %v323_v4 = vadd.f32 %v322_v55, %v3114_v54 }
 0x12a   :  { %v324_v59 = vpop.f32.mrf.mxu0 }
 0x12b   :  { %v554_v61 = vpack.c.bf16 %v486_v57, %v484_v56  ;;  %v325_v2 = vadd.f32 %v324_v59, %v3111_v51  ;;  %v487_v13 = vmax.f32 %v323_v4, 0.0 }
 0x12c   :  { %v326_v1 = vpop.f32.mrf.mxu0 }
 0x12d   :  { %v327_v3 = vadd.f32 %v326_v1, %v3114_v54  ;;  %851 = vmatprep.mubr.bf16.mxu1 %v554_v61  ;;  %v488_v11 = vmax.f32 %v325_v2, 0.0 }
 0x12e   :  { %v328_v5 = vpop.f32.mrf.mxu0  ;;  %852 = vmatmul.mubr.bf16.gmra.mxu1 %v553_v63 }
 0x12f   :  { %v329_v7 = vadd.f32 %v328_v5, %v3111_v51  ;;  %v489_v9 = vmax.f32 %v327_v3, 0.0 }
 0x130   :  { %v332_v10 = vpop.f32.mrf.mxu0 }
 0x131   :  { %v490_v12 = vmax.f32 %v329_v7, 0.0  ;;  %v555_v18 = vpack.c.bf16 %v489_v9, %v487_v13  ;;  %v333_v22 = vadd.f32 %v332_v10, %v3114_v54 }
 0x132   :  { %v334_v14 = vpop.f32.mrf.mxu0 }
 0x133   :  { %v556_v16 = vpack.c.bf16 %v490_v12, %v488_v11  ;;  %v335_v20 = vadd.f32 %v334_v14, %v3111_v51  ;;  %v491_v30 = vmax.f32 %v333_v22, 0.0 }
 0x134   :  { %v336_v19 = vpop.f32.mrf.mxu0 }
 0x135   :  { %v337_v21 = vadd.f32 %v336_v19, %v3114_v54  ;;  %861 = vmatprep.mubr.bf16.mxu1 %v556_v16  ;;  %v492_v28 = vmax.f32 %v335_v20, 0.0 }
 0x136   :  { %v338_v23 = vpop.f32.mrf.mxu0  ;;  %862 = vmatmul.mubr.bf16.gmra.mxu1 %v555_v18 }
 0x137   :  { %v339_v25 = vadd.f32 %v338_v23, %v3111_v51  ;;  %v493_v26 = vmax.f32 %v337_v21, 0.0 }
 0x138   :  { %v342_v27 = vpop.f32.mrf.mxu0 }
 0x139   :  { %v494_v29 = vmax.f32 %v339_v25, 0.0  ;;  %v557_v33 = vpack.c.bf16 %v493_v26, %v491_v30  ;;  %v343_v37 = vadd.f32 %v342_v27, %v3114_v54 }
 0x13a   :  { %v344_v31 = vpop.f32.mrf.mxu0 }
 0x13b   :  { %v558_v32 = vpack.c.bf16 %v494_v29, %v492_v28  ;;  %v345_v35 = vadd.f32 %v344_v31, %v3111_v51  ;;  %v495_v44 = vmax.f32 %v343_v37, 0.0 }
 0x13c   :  { %v346_v34 = vpop.f32.mrf.mxu0 }
 0x13d   :  { %v347_v36 = vadd.f32 %v346_v34, %v3114_v54  ;;  %871 = vmatprep.mubr.bf16.mxu1 %v558_v32  ;;  %v496_v42 = vmax.f32 %v345_v35, 0.0 }
 0x13e   :  { %v348_v38 = vpop.f32.mrf.mxu0  ;;  %872 = vmatmul.mubr.bf16.gmra.mxu1 %v557_v33 }
 0x13f   :  { %v349_v39 = vadd.f32 %v348_v38, %v3111_v51  ;;  %v497_v40 = vmax.f32 %v347_v36, 0.0  ;;  %v2633_v36 = vld [vmem:[#allocation7 + $0x84] ss:$8 sps:$4 sm:$0xff]   ;;  %v2631_v38 = vld [vmem:[#allocation7 + $0x80] ss:$8 sps:$4 sm:$0xff]  }
 0x140   :  { %v352_v41 = vpop.f32.mrf.mxu0  ;;  %1360 = vmatprep.subr.bf16.mxu0 %v2633_v36 }
 0x141   :  { %v498_v43 = vmax.f32 %v349_v39, 0.0  ;;  %v559_v49 = vpack.c.bf16 %v497_v40, %v495_v44  ;;  %v353_v55 = vadd.f32 %v352_v41, %v3114_v54  ;;  %1361 = vmatpush2.bf16.msra.mxu0 %v2631_v38 }
 0x142   :  { %v354_v45 = vpop.f32.mrf.mxu0  ;;  %1802 = vmatprep.subr.bf16.mxu0 %v2785_v0 }
 0x143   :  { %v560_v46 = vpack.c.bf16 %v498_v43, %v496_v42  ;;  %v355_v52 = vadd.f32 %v354_v45, %v3111_v51  ;;  %v499_v62 = vmax.f32 %v353_v55, 0.0 }
 0x144   :  { %v356_v50 = vpop.f32.mrf.mxu0 }
 0x145   :  { %v357_v53 = vadd.f32 %v356_v50, %v3114_v54  ;;  %881 = vmatprep.mubr.bf16.mxu1 %v560_v46  ;;  %v500_v60 = vmax.f32 %v355_v52, 0.0 }
 0x146   :  { %v358_v56 = vpop.f32.mrf.mxu0  ;;  %882 = vmatmul.mubr.bf16.gmra.mxu1 %v559_v49 }
 0x147   :  { %v359_v57 = vadd.f32 %v358_v56, %v3111_v51  ;;  %v501_v58 = vmax.f32 %v357_v53, 0.0 }
 0x148   :  { %v362_v59 = vpop.f32.mrf.mxu0 }
 0x149   :  { %v502_v61 = vmax.f32 %v359_v57, 0.0  ;;  %v561_v2 = vpack.c.bf16 %v501_v58, %v499_v62  ;;  %v363_v6 = vadd.f32 %v362_v59, %v3114_v54 }
 0x14a   :  { %v364_v63 = vpop.f32.mrf.mxu0 }
 0x14b   :  { %v562_v1 = vpack.c.bf16 %v502_v61, %v500_v60  ;;  %v365_v4 = vadd.f32 %v364_v63, %v3111_v51  ;;  %v503_v13 = vmax.f32 %v363_v6, 0.0 }
 0x14c   :  { %v366_v3 = vpop.f32.mrf.mxu0 }
 0x14d   :  { %v367_v5 = vadd.f32 %v366_v3, %v3114_v54  ;;  %891 = vmatprep.mubr.bf16.mxu1 %v562_v1  ;;  %v504_v11 = vmax.f32 %v365_v4, 0.0 }
 0x14e   :  { %v368_v7 = vpop.f32.mrf.mxu0  ;;  %892 = vmatmul.mubr.bf16.gmra.mxu1 %v561_v2 }
 0x14f   :  { %v369_v8 = vadd.f32 %v368_v7, %v3111_v51  ;;  %v505_v9 = vmax.f32 %v367_v5, 0.0 }
 0x150   :  { %v372_v10 = vpop.f32.mrf.mxu0 }
 0x151   :  { %v506_v12 = vmax.f32 %v369_v8, 0.0  ;;  %v563_v16 = vpack.c.bf16 %v505_v9, %v503_v13  ;;  %v373_v20 = vadd.f32 %v372_v10, %v3114_v54 }
 0x152   :  { %v374_v14 = vpop.f32.mrf.mxu0 }
 0x153   :  { %v564_v15 = vpack.c.bf16 %v506_v12, %v504_v11  ;;  %v375_v18 = vadd.f32 %v374_v14, %v3111_v51  ;;  %v507_v27 = vmax.f32 %v373_v20, 0.0 }
 0x154   :  { %v376_v17 = vpop.f32.mrf.mxu0 }
 0x155   :  { %v377_v19 = vadd.f32 %v376_v17, %v3114_v54  ;;  %901 = vmatprep.mubr.bf16.mxu1 %v564_v15  ;;  %v508_v25 = vmax.f32 %v375_v18, 0.0 }
 0x156   :  { %v378_v21 = vpop.f32.mrf.mxu0  ;;  %902 = vmatmul.mubr.bf16.gmra.mxu1 %v563_v16 }
 0x157   :  { %v379_v22 = vadd.f32 %v378_v21, %v3111_v51  ;;  %v509_v23 = vmax.f32 %v377_v19, 0.0 }
 0x158   :  { %v382_v24 = vpop.f32.mrf.mxu0 }
 0x159   :  { %v510_v26 = vmax.f32 %v379_v22, 0.0  ;;  %v565_v30 = vpack.c.bf16 %v509_v23, %v507_v27  ;;  %v383_v34 = vadd.f32 %v382_v24, %v3114_v54 }
 0x15a   :  { %v384_v28 = vpop.f32.mrf.mxu0 }
 0x15b   :  { %v566_v29 = vpack.c.bf16 %v510_v26, %v508_v25  ;;  %v385_v32 = vadd.f32 %v384_v28, %v3111_v51  ;;  %v511_v43 = vmax.f32 %v383_v34, 0.0 }
 0x15c   :  { %v386_v31 = vpop.f32.mrf.mxu0 }
 0x15d   :  { %v387_v33 = vadd.f32 %v386_v31, %v3114_v54  ;;  %911 = vmatprep.mubr.bf16.mxu1 %v566_v29  ;;  %v512_v41 = vmax.f32 %v385_v32, 0.0 }
 0x15e   :  { %v388_v35 = vpop.f32.mrf.mxu0  ;;  %912 = vmatmul.mubr.bf16.gmra.mxu1 %v565_v30 }
 0x15f   :  { %v389_v37 = vadd.f32 %v388_v35, %v3111_v51  ;;  %v513_v39 = vmax.f32 %v387_v33, 0.0 }
 0x160   :  { %v392_v40 = vpop.f32.mrf.mxu0 }
 0x161   :  { %v514_v42 = vmax.f32 %v389_v37, 0.0  ;;  %v567_v46 = vpack.c.bf16 %v513_v39, %v511_v43  ;;  %v393_v53 = vadd.f32 %v392_v40, %v3114_v54 }
 0x162   :  { %v394_v44 = vpop.f32.mrf.mxu0 }
 0x163   :  { %v568_v45 = vpack.c.bf16 %v514_v42, %v512_v41  ;;  %v395_v50 = vadd.f32 %v394_v44, %v3111_v51  ;;  %v515_v61 = vmax.f32 %v393_v53, 0.0 }
 0x164   :  { %v396_v49 = vpop.f32.mrf.mxu0 }
 0x165   :  { %v397_v52 = vadd.f32 %v396_v49, %v3114_v54  ;;  %921 = vmatprep.mubr.bf16.mxu1 %v568_v45  ;;  %v516_v59 = vmax.f32 %v395_v50, 0.0 }
 0x166   :  { %v398_v55 = vpop.f32.mrf.mxu0  ;;  %922 = vmatmul.mubr.bf16.gmra.mxu1 %v567_v46 }
 0x167   :  { %v399_v56 = vadd.f32 %v398_v55, %v3111_v51  ;;  %v517_v57 = vmax.f32 %v397_v52, 0.0 }
 0x168   :  { %v402_v58 = vpop.f32.mrf.mxu0 }
 0x169   :  { %v518_v60 = vmax.f32 %v399_v56, 0.0  ;;  %v569_v1 = vpack.c.bf16 %v517_v57, %v515_v61  ;;  %v403_v5 = vadd.f32 %v402_v58, %v3114_v54 }
 0x16a   :  { %v404_v62 = vpop.f32.mrf.mxu0 }
 0x16b   :  { %v570_v63 = vpack.c.bf16 %v518_v60, %v516_v59  ;;  %v405_v3 = vadd.f32 %v404_v62, %v3111_v51  ;;  %v519_v12 = vmax.f32 %v403_v5, 0.0 }
 0x16c   :  { %v406_v2 = vpop.f32.mrf.mxu0 }
 0x16d   :  { %v407_v4 = vadd.f32 %v406_v2, %v3114_v54  ;;  %931 = vmatprep.mubr.bf16.mxu1 %v570_v63  ;;  %v520_v10 = vmax.f32 %v405_v3, 0.0 }
 0x16e   :  { %v408_v6 = vpop.f32.mrf.mxu0  ;;  %932 = vmatmul.mubr.bf16.gmra.mxu1 %v569_v1 }
 0x16f   :  { %v409_v7 = vadd.f32 %v408_v6, %v3111_v51  ;;  %v521_v8 = vmax.f32 %v407_v4, 0.0 }
 0x170   :  { %v412_v9 = vpop.f32.mrf.mxu0 }
 0x171   :  { %v522_v11 = vmax.f32 %v409_v7, 0.0  ;;  %v571_v15 = vpack.c.bf16 %v521_v8, %v519_v12  ;;  %v413_v19 = vadd.f32 %v412_v9, %v3114_v54 }
 0x172   :  { %v414_v13 = vpop.f32.mrf.mxu0 }
 0x173   :  { %v572_v14 = vpack.c.bf16 %v522_v11, %v520_v10  ;;  %v415_v17 = vadd.f32 %v414_v13, %v3111_v51  ;;  %v523_v26 = vmax.f32 %v413_v19, 0.0 }
 0x174   :  { %v416_v16 = vpop.f32.mrf.mxu0 }
 0x175   :  { %v417_v18 = vadd.f32 %v416_v16, %v3114_v54  ;;  %941 = vmatprep.mubr.bf16.mxu1 %v572_v14  ;;  %v524_v24 = vmax.f32 %v415_v17, 0.0 }
 0x176   :  { %v418_v20 = vpop.f32.mrf.mxu0  ;;  %942 = vmatmul.mubr.bf16.gmra.mxu1 %v571_v15 }
 0x177   :  { %v419_v21 = vadd.f32 %v418_v20, %v3111_v51  ;;  %v525_v22 = vmax.f32 %v417_v18, 0.0 }
 0x178   :  { %v422_v23 = vpop.f32.mrf.mxu0 }
 0x179   :  { %v526_v25 = vmax.f32 %v419_v21, 0.0  ;;  %v573_v29 = vpack.c.bf16 %v525_v22, %v523_v26  ;;  %v423_v33 = vadd.f32 %v422_v23, %v3114_v54 }
 0x17a   :  { %v424_v27 = vpop.f32.mrf.mxu0 }
 0x17b   :  { %v574_v28 = vpack.c.bf16 %v526_v25, %v524_v24  ;;  %v425_v31 = vadd.f32 %v424_v27, %v3111_v51  ;;  %v527_v40 = vmax.f32 %v423_v33, 0.0 }
 0x17c   :  { %v426_v30 = vpop.f32.mrf.mxu0 }
 0x17d   :  { %v427_v32 = vadd.f32 %v426_v30, %v3114_v54  ;;  %951 = vmatprep.mubr.bf16.mxu1 %v574_v28  ;;  %v528_v38 = vmax.f32 %v425_v31, 0.0 }
 0x17e   :  { %v428_v34 = vpop.f32.mrf.mxu0  ;;  %952 = vmatmul.mubr.bf16.gmra.mxu1 %v573_v29 }
 0x17f   :  { %v429_v35 = vadd.f32 %v428_v34, %v3111_v51  ;;  %v529_v36 = vmax.f32 %v427_v32, 0.0 }
 0x180   :  { %v432_v37 = vpop.f32.mrf.mxu0 }
 0x181   :  { %v530_v39 = vmax.f32 %v429_v35, 0.0  ;;  %v575_v43 = vpack.c.bf16 %v529_v36, %v527_v40  ;;  %v433_v49 = vadd.f32 %v432_v37, %v3114_v54  ;;  %v3208_v40 = vld [vmem:[%s3493_s7 + $0x20] sm:$0xff]  }
 0x182   :  { %v434_v41 = vpop.f32.mrf.mxu0 }
 0x183   :  { %v576_v42 = vpack.c.bf16 %v530_v39, %v528_v38  ;;  %v435_v45 = vadd.f32 %v434_v41, %v3111_v51  ;;  %v531_v58 = vmax.f32 %v433_v49, 0.0  ;;  %v2634_v39 = vld [vmem:[%s3493_s7 + $0x38] sm:$0xff]  }
 0x184   :  { %v436_v44 = vpop.f32.mrf.mxu0  ;;  %2506 = vmatpush1.bf16.msra.mxu1 %v2634_v39  ;;  %v617_v41 = vld [vmem:[#allocation5] sm:$0x3] }
 0x185   :  { %v437_v46 = vadd.f32 %v436_v44, %v3114_v54  ;;  %961 = vmatprep.mubr.bf16.mxu1 %v576_v42  ;;  %v532_v56 = vmax.f32 %v435_v45, 0.0  ;;  %2491 = vmatprep.subr.bf16.mxu1 %v2785_v0  ;;  %v3216_v44 = vrot.slane %v617_v41, %v3105_v48 }
 0x186   :  { %v438_v50 = vpop.f32.mrf.mxu0  ;;  %962 = vmatmul.mubr.bf16.gmra.mxu1 %v575_v43  ;;  %v3213_v43 = vrot.slane %v617_v41, %v3103_v47 }
 0x187   :  { %v439_v52 = vadd.f32 %v438_v50, %v3111_v51  ;;  %v533_v53 = vmax.f32 %v437_v46, 0.0 }
 0x188   :  { %v442_v55 = vpop.f32.mrf.mxu0 }
 0x189   :  { %v534_v57 = vmax.f32 %v439_v52, 0.0  ;;  %v577_v61 = vpack.c.bf16 %v533_v53, %v531_v58  ;;  %v443_v2 = vadd.f32 %v442_v55, %v3114_v54  ;;  %v3223_v52 = vld [vmem:[%s3493_s7 + $0x18] sm:$0xff]  }
 0x18a   :  { %v444_v59 = vpop.f32.mrf.mxu0 }
 0x18b   :  { %v578_v60 = vpack.c.bf16 %v534_v57, %v532_v56  ;;  %v445_v63 = vadd.f32 %v444_v59, %v3111_v51  ;;  %v535_v9 = vmax.f32 %v443_v2, 0.0 }
 0x18c   :  { %v446_v62 = vpop.f32.mrf.mxu0 }
 0x18d   :  { %v447_v1 = vadd.f32 %v446_v62, %v3114_v54  ;;  %971 = vmatprep.mubr.bf16.mxu1 %v578_v60  ;;  %v536_v7 = vmax.f32 %v445_v63, 0.0 }
 0x18e   :  { %v448_v3 = vpop.f32.mrf.mxu0  ;;  %972 = vmatmul.mubr.bf16.gmra.mxu1 %v577_v61 }
 0x18f   :  { %v449_v4 = vadd.f32 %v448_v3, %v3111_v51  ;;  %v537_v5 = vmax.f32 %v447_v1, 0.0 }
 0x190   :  { %v452_v6 = vpop.f32.mrf.mxu0 }
 0x191   :  { %v538_v8 = vmax.f32 %v449_v4, 0.0  ;;  %v579_v12 = vpack.c.bf16 %v537_v5, %v535_v9  ;;  %v453_v16 = vadd.f32 %v452_v6, %v3114_v54 }
 0x192   :  { %v454_v10 = vpop.f32.mrf.mxu0 }
 0x193   :  { %v580_v11 = vpack.c.bf16 %v538_v8, %v536_v7  ;;  %v455_v14 = vadd.f32 %v454_v10, %v3111_v51  ;;  %v539_v23 = vmax.f32 %v453_v16, 0.0 }
 0x194   :  { %v456_v13 = vpop.f32.mrf.mxu0 }
 0x195   :  { %v457_v15 = vadd.f32 %v456_v13, %v3114_v54  ;;  %981 = vmatprep.mubr.bf16.mxu1 %v580_v11  ;;  %v540_v21 = vmax.f32 %v455_v14, 0.0 }
 0x196   :  { %v458_v17 = vpop.f32.mrf.mxu0  ;;  %982 = vmatmul.mubr.bf16.gmra.mxu1 %v579_v12  ;;  %v2639_v12 = vld [vmem:[%s3493_s7 + $0x10] sm:$0xff]  }
 0x197   :  { %v459_v18 = vadd.f32 %v458_v17, %v3111_v51  ;;  %v541_v19 = vmax.f32 %v457_v15, 0.0 }
 0x198   :  { %v462_v20 = vpop.f32.mrf.mxu0 }
 0x199   :  { %v542_v22 = vmax.f32 %v459_v18, 0.0  ;;  %v581_v26 = vpack.c.bf16 %v541_v19, %v539_v23  ;;  %v463_v30 = vadd.f32 %v462_v20, %v3114_v54 }
 0x19a   :  { %v464_v24 = vpop.f32.mrf.mxu0 }
 0x19b   :  { %v582_v25 = vpack.c.bf16 %v542_v22, %v540_v21  ;;  %v465_v28 = vadd.f32 %v464_v24, %v3111_v51  ;;  %v543_v36 = vmax.f32 %v463_v30, 0.0 }
 0x19c   :  { %v466_v27 = vpop.f32.mrf.mxu0 }
 0x19d   :  { %v467_v29 = vadd.f32 %v466_v27, %v3114_v54  ;;  %991 = vmatprep.mubr.bf16.mxu1 %v582_v25  ;;  %v544_v34 = vmax.f32 %v465_v28, 0.0  ;;  %v2635_v54 = vld [vmem:[%s3493_s7 + $0x30] sm:$0xff]   ;;  %v2640_v27 = vld [vmem:[%s3493_s7 + $0x8] sm:$0xff]  }
 0x19e   :  { %v468_v31 = vpop.f32.mrf.mxu0  ;;  %992 = vmatmul.mubr.bf16.gmra.mxu1 %v581_v26 }
 0x19f   :  { %v469_v32 = vadd.f32 %v468_v31, %v3111_v51  ;;  %v545_v33 = vmax.f32 %v467_v29, 0.0  ;;  %2507 = vmatpush1.bf16.msra.mxu1 %v2635_v54  ;;  %v2636_v51 = vld [vmem:[%s3493_s7 + $0x28] sm:$0xff]  }
 0x1a0   :  { %2492 = vmatprep.subr.bf16.mxu1 %v2785_v0 }
 0x1a1   :  { %v546_v35 = vmax.f32 %v469_v32, 0.0  ;;  %v583_v38 = vpack.c.bf16 %v545_v33, %v543_v36 }
 0x1a3   :  { %v584_v37 = vpack.c.bf16 %v546_v35, %v544_v34  ;;  %2508 = vmatpush1.bf16.msra.mxu1 %v2636_v51 }
 0x1a4   :  { %2493 = vmatprep.subr.bf16.mxu1 %v2785_v0 }
 0x1a5   :  { %1001 = vmatprep.mubr.bf16.mxu1 %v584_v37  ;;  %v2641_v37 = vld [vmem:[%s3493_s7] sm:$0xff]  }
 0x1a6   :  { %1002 = vmatmul.mubr.bf16.gmra.mxu1 %v583_v38 }
 0x1a7   :  { %2509 = vmatpush1.bf16.msra.mxu1 %v3208_v40 }
 0x1a8   :  { %2494 = vmatprep.subr.bf16.mxu1 %v2785_v0 }
 0x1ab   :  { %2510 = vmatpush1.bf16.msra.mxu1 %v3223_v52 }
 0x1ac   :  { %2495 = vmatprep.subr.bf16.mxu1 %v2785_v0 }
 0x1af   :  { %2511 = vmatpush1.bf16.msra.mxu1 %v2639_v12 }
 0x1b0   :  { %2496 = vmatprep.subr.bf16.mxu1 %v2785_v0 }
 0x1b3   :  { %2512 = vmatpush1.bf16.msra.mxu1 %v2640_v27 }
 0x1b4   :  { %2497 = vmatprep.subr.bf16.mxu1 %v2785_v0 }
 0x1b7   :  { %2513 = vmatpush1.bf16.msra.mxu1 %v2641_v37 }
 0x1b8   :  { %2498 = vmatprep.subr.bf16.mxu1 %v2785_v0 }
 0x1d6   :  { %v823_v42 = vpop.f32.mrf.mxu1 }
 0x1d7   :  { %v824_v53 = vadd.f32 %v823_v42, %v3216_v44 }
 0x1d8   :  { %v825_v45 = vpop.f32.mrf.mxu1 }
 0x1d9   :  { %v826_v49 = vadd.f32 %v825_v45, %v3213_v43  ;;  %v1012_v61 = vmax.f32 %v824_v53, 0.0  ;;  %v2642_v45 = vld [vmem:[%s3493_s7 + $0x78] sm:$0xff]  }
 0x1da   :  { %v827_v46 = vpop.f32.mrf.mxu1  ;;  %2514 = vmatpush2.bf16.msra.mxu1 %v2642_v45 }
 0x1db   :  { %v828_v50 = vadd.f32 %v827_v46, %v3216_v44  ;;  %v1013_v59 = vmax.f32 %v826_v49, 0.0  ;;  %2499 = vmatprep.subr.bf16.mxu1 %v2785_v0 }
 0x1dc   :  { %v829_v55 = vpop.f32.mrf.mxu1 }
 0x1dd   :  { %v830_v56 = vadd.f32 %v829_v55, %v3213_v43  ;;  %v1014_v57 = vmax.f32 %v828_v50, 0.0 }
 0x1de   :  { %v833_v58 = vpop.f32.mrf.mxu1 }
 0x1df   :  { %v1015_v60 = vmax.f32 %v830_v56, 0.0  ;;  %v1088_v1 = vpack.c.bf16 %v1014_v57, %v1012_v61  ;;  %v834_v5 = vadd.f32 %v833_v58, %v3216_v44  ;;  %v2643_v57 = vld [vmem:[%s3493_s7 + $0x70] sm:$0xff]  }
 0x1e0   :  { %v835_v62 = vpop.f32.mrf.mxu1  ;;  %2515 = vmatpush2.bf16.msra.mxu1 %v2643_v57 }
 0x1e1   :  { %v1089_v63 = vpack.c.bf16 %v1015_v60, %v1013_v59  ;;  %v836_v3 = vadd.f32 %v835_v62, %v3213_v43  ;;  %v1016_v13 = vmax.f32 %v834_v5, 0.0  ;;  %2500 = vmatprep.subr.bf16.mxu1 %v2785_v0 }
 0x1e2   :  { %v837_v2 = vpop.f32.mrf.mxu1 }
 0x1e3   :  { %v838_v4 = vadd.f32 %v837_v2, %v3216_v44  ;;  %1362 = vmatprep.mubr.bf16.mxu0 %v1089_v63  ;;  %v1017_v10 = vmax.f32 %v836_v3, 0.0  ;;  %v2644_v2 = vld [vmem:[%s3493_s7 + $0x68] sm:$0xff]  }
 0x1e4   :  { %v839_v6 = vpop.f32.mrf.mxu1  ;;  %1363 = vmatmul.mubr.bf16.vlgmr.msra.gmra.mxu0 %v1088_v1  ;;  %2516 = vmatpush2.bf16.msra.mxu1 %v2644_v2 }
 0x1e5   :  { %v840_v7 = vadd.f32 %v839_v6, %v3213_v43  ;;  %1803 = vmatpush1.bf16.msra.mxu0 %v2634_v39  ;;  %v1018_v8 = vmax.f32 %v838_v4, 0.0  ;;  %2501 = vmatprep.subr.bf16.mxu1 %v2785_v0 }
 0x1e6   :  { %v843_v9 = vpop.f32.mrf.mxu1  ;;  %1804 = vmatprep.subr.bf16.mxu0 %v2785_v0 }
 0x1e7   :  { %v1019_v11 = vmax.f32 %v840_v7, 0.0  ;;  %v1090_v16 = vpack.c.bf16 %v1018_v8, %v1016_v13  ;;  %v844_v20 = vadd.f32 %v843_v9, %v3216_v44 }
 0x1e8   :  { %v845_v14 = vpop.f32.mrf.mxu1 }
 0x1e9   :  { %v1091_v15 = vpack.c.bf16 %v1019_v11, %v1017_v10  ;;  %1805 = vmatpush1.bf16.msra.mxu0 %v2635_v54  ;;  %v846_v18 = vadd.f32 %v845_v14, %v3213_v43  ;;  %v1020_v28 = vmax.f32 %v844_v20, 0.0  ;;  %v2645_v10 = vld [vmem:[%s3493_s7 + $0x60] sm:$0xff]  }
 0x1ea   :  { %v847_v17 = vpop.f32.mrf.mxu1  ;;  %1806 = vmatprep.subr.bf16.mxu0 %v2785_v0  ;;  %2517 = vmatpush2.bf16.msra.mxu1 %v2645_v10 }
 0x1eb   :  { %v848_v19 = vadd.f32 %v847_v17, %v3216_v44  ;;  %1372 = vmatprep.mubr.bf16.mxu0 %v1091_v15  ;;  %v1021_v25 = vmax.f32 %v846_v18, 0.0  ;;  %2502 = vmatprep.subr.bf16.mxu1 %v2785_v0  ;;  %v2646_v18 = vld [vmem:[%s3493_s7 + $0x58] sm:$0xff]  }
 0x1ec   :  { %v849_v21 = vpop.f32.mrf.mxu1  ;;  %1373 = vmatmul.mubr.bf16.gmra.mxu0 %v1090_v16 }
 0x1ed   :  { %v850_v22 = vadd.f32 %v849_v21, %v3213_v43  ;;  %1807 = vmatpush1.bf16.msra.mxu0 %v2636_v51  ;;  %v1022_v23 = vmax.f32 %v848_v19, 0.0 }
 0x1ee   :  { %v853_v24 = vpop.f32.mrf.mxu1  ;;  %1808 = vmatprep.subr.bf16.mxu0 %v2785_v0  ;;  %2518 = vmatpush2.bf16.msra.mxu1 %v2646_v18 }
 0x1ef   :  { %v1023_v26 = vmax.f32 %v850_v22, 0.0  ;;  %v1092_v31 = vpack.c.bf16 %v1022_v23, %v1020_v28  ;;  %v854_v35 = vadd.f32 %v853_v24, %v3216_v44  ;;  %2503 = vmatprep.subr.bf16.mxu1 %v2785_v0 }
 0x1f0   :  { %v855_v29 = vpop.f32.mrf.mxu1 }
 0x1f1   :  { %v1093_v30 = vpack.c.bf16 %v1023_v26, %v1021_v25  ;;  %1809 = vmatpush1.bf16.msra.mxu0 %v3208_v40  ;;  %v856_v33 = vadd.f32 %v855_v29, %v3213_v43  ;;  %v1024_v41 = vmax.f32 %v854_v35, 0.0 }
 0x1f2   :  { %v857_v32 = vpop.f32.mrf.mxu1  ;;  %1810 = vmatprep.subr.bf16.mxu0 %v2785_v0 }
 0x1f3   :  { %v858_v34 = vadd.f32 %v857_v32, %v3216_v44  ;;  %1382 = vmatprep.mubr.bf16.mxu0 %v1093_v30  ;;  %v1025_v51 = vmax.f32 %v856_v33, 0.0 }
 0x1f4   :  { %v859_v36 = vpop.f32.mrf.mxu1  ;;  %1383 = vmatmul.mubr.bf16.gmra.mxu0 %v1092_v31 }
 0x1f5   :  { %v860_v38 = vadd.f32 %v859_v36, %v3213_v43  ;;  %1811 = vmatpush1.bf16.msra.mxu0 %v3223_v52  ;;  %v1026_v39 = vmax.f32 %v858_v34, 0.0 }
 0x1f6   :  { %v863_v54 = vpop.f32.mrf.mxu1  ;;  %1812 = vmatprep.subr.bf16.mxu0 %v2785_v0 }
 0x1f7   :  { %v1027_v40 = vmax.f32 %v860_v38, 0.0  ;;  %v1094_v49 = vpack.c.bf16 %v1026_v39, %v1024_v41  ;;  %v864_v55 = vadd.f32 %v863_v54, %v3216_v44 }
 0x1f8   :  { %v865_v42 = vpop.f32.mrf.mxu1 }
 0x1f9   :  { %v1095_v46 = vpack.c.bf16 %v1027_v40, %v1025_v51  ;;  %1813 = vmatpush1.bf16.msra.mxu0 %v2639_v12  ;;  %v866_v52 = vadd.f32 %v865_v42, %v3213_v43  ;;  %v1028_v63 = vmax.f32 %v864_v55, 0.0 }
 0x1fa   :  { %v867_v50 = vpop.f32.mrf.mxu1  ;;  %1814 = vmatprep.subr.bf16.mxu0 %v2785_v0 }
 0x1fb   :  { %v868_v53 = vadd.f32 %v867_v50, %v3216_v44  ;;  %1392 = vmatprep.mubr.bf16.mxu0 %v1095_v46  ;;  %v1029_v61 = vmax.f32 %v866_v52, 0.0 }
 0x1fc   :  { %v869_v56 = vpop.f32.mrf.mxu1  ;;  %1393 = vmatmul.mubr.bf16.gmra.mxu0 %v1094_v49 }
 0x1fd   :  { %v870_v58 = vadd.f32 %v869_v56, %v3213_v43  ;;  %1815 = vmatpush1.bf16.msra.mxu0 %v2640_v27  ;;  %v1030_v59 = vmax.f32 %v868_v53, 0.0 }
 0x1fe   :  { %v873_v60 = vpop.f32.mrf.mxu1  ;;  %1816 = vmatprep.subr.bf16.mxu0 %v2785_v0 }
 0x1ff   :  { %v1031_v62 = vmax.f32 %v870_v58, 0.0  ;;  %v1096_v4 = vpack.c.bf16 %v1030_v59, %v1028_v63  ;;  %v874_v8 = vadd.f32 %v873_v60, %v3216_v44 }
 0x200   :  { %v875_v1 = vpop.f32.mrf.mxu1 }
 0x201   :  { %v1097_v3 = vpack.c.bf16 %v1031_v62, %v1029_v61  ;;  %1817 = vmatpush1.bf16.msra.mxu0 %v2641_v37  ;;  %v876_v6 = vadd.f32 %v875_v1, %v3213_v43  ;;  %v1032_v16 = vmax.f32 %v874_v8, 0.0 }
 0x202   :  { %v877_v5 = vpop.f32.mrf.mxu1  ;;  %1818 = vmatprep.subr.bf16.mxu0 %v2785_v0 }
 0x203   :  { %v878_v7 = vadd.f32 %v877_v5, %v3216_v44  ;;  %1402 = vmatprep.mubr.bf16.mxu0 %v1097_v3  ;;  %v1033_v14 = vmax.f32 %v876_v6, 0.0 }
 0x204   :  { %v879_v9 = vpop.f32.mrf.mxu1  ;;  %1403 = vmatmul.mubr.bf16.gmra.mxu0 %v1096_v4 }
 0x205   :  { %v880_v11 = vadd.f32 %v879_v9, %v3213_v43  ;;  %1819 = vmatpush2.bf16.msra.mxu0 %v2642_v45  ;;  %v1034_v12 = vmax.f32 %v878_v7, 0.0 }
 0x206   :  { %v883_v13 = vpop.f32.mrf.mxu1  ;;  %1820 = vmatprep.subr.bf16.mxu0 %v2785_v0 }
 0x207   :  { %v1035_v15 = vmax.f32 %v880_v11, 0.0  ;;  %v1098_v20 = vpack.c.bf16 %v1034_v12, %v1032_v16  ;;  %v884_v24 = vadd.f32 %v883_v13, %v3216_v44 }
 0x208   :  { %v885_v17 = vpop.f32.mrf.mxu1 }
 0x209   :  { %v1099_v19 = vpack.c.bf16 %v1035_v15, %v1033_v14  ;;  %1821 = vmatpush2.bf16.msra.mxu0 %v2643_v57  ;;  %v886_v22 = vadd.f32 %v885_v17, %v3213_v43  ;;  %v1036_v31 = vmax.f32 %v884_v24, 0.0 }
 0x20a   :  { %v887_v21 = vpop.f32.mrf.mxu1  ;;  %1822 = vmatprep.subr.bf16.mxu0 %v2785_v0 }
 0x20b   :  { %v888_v23 = vadd.f32 %v887_v21, %v3216_v44  ;;  %1412 = vmatprep.mubr.bf16.mxu0 %v1099_v19  ;;  %v1037_v29 = vmax.f32 %v886_v22, 0.0 }
 0x20c   :  { %v889_v25 = vpop.f32.mrf.mxu1  ;;  %1413 = vmatmul.mubr.bf16.gmra.mxu0 %v1098_v20 }
 0x20d   :  { %v890_v26 = vadd.f32 %v889_v25, %v3213_v43  ;;  %1823 = vmatpush2.bf16.msra.mxu0 %v2644_v2  ;;  %v1038_v27 = vmax.f32 %v888_v23, 0.0 }
 0x20e   :  { %v893_v28 = vpop.f32.mrf.mxu1  ;;  %1824 = vmatprep.subr.bf16.mxu0 %v2785_v0 }
 0x20f   :  { %v1039_v30 = vmax.f32 %v890_v26, 0.0  ;;  %v1100_v34 = vpack.c.bf16 %v1038_v27, %v1036_v31  ;;  %v894_v38 = vadd.f32 %v893_v28, %v3216_v44  ;;  %v2649_v26 = vld [vmem:[%s3493_s7 + $0x40] sm:$0xff]  }
 0x210   :  { %v895_v32 = vpop.f32.mrf.mxu1 }
 0x211   :  { %v1101_v33 = vpack.c.bf16 %v1039_v30, %v1037_v29  ;;  %1825 = vmatpush2.bf16.msra.mxu0 %v2645_v10  ;;  %v896_v36 = vadd.f32 %v895_v32, %v3213_v43  ;;  %v1040_v45 = vmax.f32 %v894_v38, 0.0  ;;  %v2647_v10 = vld [vmem:[%s3493_s7 + $0x50] sm:$0xff]  }
 0x212   :  { %v897_v35 = vpop.f32.mrf.mxu1  ;;  %1826 = vmatprep.subr.bf16.mxu0 %v2785_v0  ;;  %2519 = vmatpush2.bf16.msra.mxu1 %v2647_v10 }
 0x213   :  { %v898_v37 = vadd.f32 %v897_v35, %v3216_v44  ;;  %1422 = vmatprep.mubr.bf16.mxu0 %v1101_v33  ;;  %v1041_v41 = vmax.f32 %v896_v36, 0.0  ;;  %2504 = vmatprep.subr.bf16.mxu1 %v2785_v0 }
 0x214   :  { %v899_v39 = vpop.f32.mrf.mxu1  ;;  %1423 = vmatmul.mubr.bf16.gmra.mxu0 %v1100_v34 }
 0x215   :  { %v900_v54 = vadd.f32 %v899_v39, %v3213_v43  ;;  %1827 = vmatpush2.bf16.msra.mxu0 %v2646_v18  ;;  %v1042_v51 = vmax.f32 %v898_v37, 0.0  ;;  %v2648_v18 = vld [vmem:[%s3493_s7 + $0x48] sm:$0xff]   ;;  %s2786_s7 = smov [#allocation11]  }
 0x216   :  { %v903_v40 = vpop.f32.mrf.mxu1  ;;  %1828 = vmatprep.subr.bf16.mxu0 %v2785_v0  ;;  %2520 = vmatpush2.bf16.msra.mxu1 %v2648_v18  ;;  %s2182_s4 = sshll.u32 %s2786_s7, 4  ;;  %s2183_s4 = int_to_ptr.vmem [resolvable:$true] %s2182_s4 }
 0x217   :  { %v1043_v42 = vmax.f32 %v900_v54, 0.0  ;;  %v1102_v50 = vpack.c.bf16 %v1042_v51, %v1040_v45  ;;  %v904_v56 = vadd.f32 %v903_v40, %v3216_v44  ;;  %2505 = vmatprep.subr.bf16.mxu1 %v2785_v0  ;;  %s2750_s22 = scalar_lea.vmem %s2183_s4, 2432  ;;  %p2755_p12 = scmp.lt.s32.totalorder %s2183_s4, %s2183_s4 }
 0x218   :  { %v905_v46 = vpop.f32.mrf.mxu1  ;;  %p2751_p11 = scmp.ne.s32.totalorder %s2183_s4, %s2750_s22  ;;  %p2756_p13 = scmp.lt.s32.totalorder %s2750_s22, %s2750_s22 }
 0x219   :  { %v1103_v49 = vpack.c.bf16 %v1043_v42, %v1041_v41  ;;  %v906_v53 = vadd.f32 %v905_v46, %v3213_v43  ;;  %v1044_v63 = vmax.f32 %v904_v56, 0.0  ;;  %1829 = vmatpush2.bf16.msra.mxu0 %v2647_v10 }
 0x21a   :  { %v907_v52 = vpop.f32.mrf.mxu1  ;;  %1830 = vmatprep.subr.bf16.mxu0 %v2785_v0  ;;  %2521 = vmatpush2.bf16.msra.mxu1 %v2649_v26  ;;  %p2757_p0 = por %p2756_p13, %p2755_p12 }
 0x21b   :  { %v908_v55 = vadd.f32 %v907_v52, %v3216_v44  ;;  %1432 = vmatprep.mubr.bf16.mxu0 %v1103_v49  ;;  %v1045_v61 = vmax.f32 %v906_v53, 0.0 }
 0x21c   :  { %v909_v57 = vpop.f32.mrf.mxu1  ;;  %1433 = vmatmul.mubr.bf16.gmra.mxu0 %v1102_v50  ;;  %p2758_p1 = pnand %p2757_p0, %p2751_p11 }
 0x21d   :  { %v910_v58 = vadd.f32 %v909_v57, %v3213_v43  ;;  %v1046_v59 = vmax.f32 %v908_v55, 0.0  ;;  %1831 = vmatpush2.bf16.msra.mxu0 %v2648_v18 }
 0x21e   :  { %v913_v60 = vpop.f32.mrf.mxu1  ;;  %1832 = vmatprep.subr.bf16.mxu0 %v2785_v0 }
 0x21f   :  { %v1047_v62 = vmax.f32 %v910_v58, 0.0  ;;  %v1104_v3 = vpack.c.bf16 %v1046_v59, %v1044_v63  ;;  %v914_v7 = vadd.f32 %v913_v60, %v3216_v44 }
 0x220   :  { %v915_v1 = vpop.f32.mrf.mxu1 }
 0x221   :  { %v1105_v2 = vpack.c.bf16 %v1047_v62, %v1045_v61  ;;  %v916_v5 = vadd.f32 %v915_v1, %v3213_v43  ;;  %v1048_v15 = vmax.f32 %v914_v7, 0.0  ;;  %1833 = vmatpush2.bf16.msra.mxu0 %v2649_v26 }
 0x222   :  { %v917_v4 = vpop.f32.mrf.mxu1 }
 0x223   :  { %v918_v6 = vadd.f32 %v917_v4, %v3216_v44  ;;  %1442 = vmatprep.mubr.bf16.mxu0 %v1105_v2  ;;  %v1049_v13 = vmax.f32 %v916_v5, 0.0 }
 0x224   :  { %v919_v8 = vpop.f32.mrf.mxu1  ;;  %1443 = vmatmul.mubr.bf16.gmra.mxu0 %v1104_v3 }
 0x225   :  { %v920_v9 = vadd.f32 %v919_v8, %v3213_v43  ;;  %v1050_v11 = vmax.f32 %v918_v6, 0.0 }
 0x226   :  { %v923_v12 = vpop.f32.mrf.mxu1 }
 0x227   :  { %v1051_v14 = vmax.f32 %v920_v9, 0.0  ;;  %v1106_v19 = vpack.c.bf16 %v1050_v11, %v1048_v15  ;;  %v924_v23 = vadd.f32 %v923_v12, %v3216_v44 }
 0x228   :  { %v925_v16 = vpop.f32.mrf.mxu1 }
 0x229   :  { %v1107_v17 = vpack.c.bf16 %v1051_v14, %v1049_v13  ;;  %v926_v21 = vadd.f32 %v925_v16, %v3213_v43  ;;  %v1052_v31 = vmax.f32 %v924_v23, 0.0 }
 0x22a   :  { %v927_v20 = vpop.f32.mrf.mxu1 }
 0x22b   :  { %v928_v22 = vadd.f32 %v927_v20, %v3216_v44  ;;  %1452 = vmatprep.mubr.bf16.mxu0 %v1107_v17  ;;  %v1053_v29 = vmax.f32 %v926_v21, 0.0 }
 0x22c   :  { %v929_v24 = vpop.f32.mrf.mxu1  ;;  %1453 = vmatmul.mubr.bf16.gmra.mxu0 %v1106_v19 }
 0x22d   :  { %v930_v25 = vadd.f32 %v929_v24, %v3213_v43  ;;  %v1054_v27 = vmax.f32 %v928_v22, 0.0 }
 0x22e   :  { %v933_v28 = vpop.f32.mrf.mxu1 }
 0x22f   :  { %v1055_v30 = vmax.f32 %v930_v25, 0.0  ;;  %v1108_v34 = vpack.c.bf16 %v1054_v27, %v1052_v31  ;;  %v934_v38 = vadd.f32 %v933_v28, %v3216_v44 }
 0x230   :  { %v935_v32 = vpop.f32.mrf.mxu1 }
 0x231   :  { %v1109_v33 = vpack.c.bf16 %v1055_v30, %v1053_v29  ;;  %v936_v36 = vadd.f32 %v935_v32, %v3213_v43  ;;  %v1056_v42 = vmax.f32 %v934_v38, 0.0 }
 0x232   :  { %v937_v35 = vpop.f32.mrf.mxu1 }
 0x233   :  { %v938_v37 = vadd.f32 %v937_v35, %v3216_v44  ;;  %1462 = vmatprep.mubr.bf16.mxu0 %v1109_v33  ;;  %v1057_v40 = vmax.f32 %v936_v36, 0.0 }
 0x234   :  { %v939_v39 = vpop.f32.mrf.mxu1  ;;  %1463 = vmatmul.mubr.bf16.gmra.mxu0 %v1108_v34 }
 0x235   :  { %v940_v0 = vadd.f32 %v939_v39, %v3213_v43  ;;  %v1058_v54 = vmax.f32 %v938_v37, 0.0 }
 0x236   :  { %v943_v51 = vpop.f32.mrf.mxu1 }
 0x237   :  { %v1059_v41 = vmax.f32 %v940_v0, 0.0  ;;  %v1110_v49 = vpack.c.bf16 %v1058_v54, %v1056_v42  ;;  %v944_v55 = vadd.f32 %v943_v51, %v3216_v44 }
 0x238   :  { %v945_v45 = vpop.f32.mrf.mxu1 }
 0x239   :  { %v1111_v46 = vpack.c.bf16 %v1059_v41, %v1057_v40  ;;  %v946_v52 = vadd.f32 %v945_v45, %v3213_v43  ;;  %v1060_v62 = vmax.f32 %v944_v55, 0.0 }
 0x23a   :  { %v947_v50 = vpop.f32.mrf.mxu1 }
 0x23b   :  { %v948_v53 = vadd.f32 %v947_v50, %v3216_v44  ;;  %1472 = vmatprep.mubr.bf16.mxu0 %v1111_v46  ;;  %v1061_v60 = vmax.f32 %v946_v52, 0.0 }
 0x23c   :  { %v949_v56 = vpop.f32.mrf.mxu1  ;;  %1473 = vmatmul.mubr.bf16.gmra.mxu0 %v1110_v49 }
 0x23d   :  { %v950_v57 = vadd.f32 %v949_v56, %v3213_v43  ;;  %v1062_v58 = vmax.f32 %v948_v53, 0.0 }
 0x23e   :  { %v953_v59 = vpop.f32.mrf.mxu1 }
 0x23f   :  { %v1063_v61 = vmax.f32 %v950_v57, 0.0  ;;  %v1112_v2 = vpack.c.bf16 %v1062_v58, %v1060_v62  ;;  %v954_v6 = vadd.f32 %v953_v59, %v3216_v44 }
 0x240   :  { %v955_v63 = vpop.f32.mrf.mxu1 }
 0x241   :  { %v1113_v1 = vpack.c.bf16 %v1063_v61, %v1061_v60  ;;  %v956_v4 = vadd.f32 %v955_v63, %v3213_v43  ;;  %v1064_v13 = vmax.f32 %v954_v6, 0.0 }
 0x242   :  { %v957_v3 = vpop.f32.mrf.mxu1 }
 0x243   :  { %v958_v5 = vadd.f32 %v957_v3, %v3216_v44  ;;  %1482 = vmatprep.mubr.bf16.mxu0 %v1113_v1  ;;  %v1065_v11 = vmax.f32 %v956_v4, 0.0 }
 0x244   :  { %v959_v7 = vpop.f32.mrf.mxu1  ;;  %1483 = vmatmul.mubr.bf16.gmra.mxu0 %v1112_v2 }
 0x245   :  { %v960_v8 = vadd.f32 %v959_v7, %v3213_v43  ;;  %v1066_v9 = vmax.f32 %v958_v5, 0.0 }
 0x246   :  { %v963_v10 = vpop.f32.mrf.mxu1 }
 0x247   :  { %v1067_v12 = vmax.f32 %v960_v8, 0.0  ;;  %v1114_v16 = vpack.c.bf16 %v1066_v9, %v1064_v13  ;;  %v964_v20 = vadd.f32 %v963_v10, %v3216_v44 }
 0x248   :  { %v965_v14 = vpop.f32.mrf.mxu1 }
 0x249   :  { %v1115_v15 = vpack.c.bf16 %v1067_v12, %v1065_v11  ;;  %v966_v18 = vadd.f32 %v965_v14, %v3213_v43  ;;  %v1068_v27 = vmax.f32 %v964_v20, 0.0 }
 0x24a   :  { %v967_v17 = vpop.f32.mrf.mxu1 }
 0x24b   :  { %v968_v19 = vadd.f32 %v967_v17, %v3216_v44  ;;  %1492 = vmatprep.mubr.bf16.mxu0 %v1115_v15  ;;  %v1069_v25 = vmax.f32 %v966_v18, 0.0 }
 0x24c   :  { %v969_v21 = vpop.f32.mrf.mxu1  ;;  %1493 = vmatmul.mubr.bf16.gmra.mxu0 %v1114_v16 }
 0x24d   :  { %v970_v22 = vadd.f32 %v969_v21, %v3213_v43  ;;  %v1070_v23 = vmax.f32 %v968_v19, 0.0 }
 0x24e   :  { %v973_v24 = vpop.f32.mrf.mxu1 }
 0x24f   :  { %v1071_v26 = vmax.f32 %v970_v22, 0.0  ;;  %v1116_v30 = vpack.c.bf16 %v1070_v23, %v1068_v27  ;;  %v974_v34 = vadd.f32 %v973_v24, %v3216_v44 }
 0x250   :  { %v975_v28 = vpop.f32.mrf.mxu1 }
 0x251   :  { %v1117_v29 = vpack.c.bf16 %v1071_v26, %v1069_v25  ;;  %v976_v32 = vadd.f32 %v975_v28, %v3213_v43  ;;  %v1072_v54 = vmax.f32 %v974_v34, 0.0  ;;  %v1158_v25 = vld [vmem:[#allocation8] sm:$0x3] }
 0x252   :  { %v977_v31 = vpop.f32.mrf.mxu1  ;;  %v3362_v27 = vrot.slane %v1158_v25, %v3103_v47  ;;  %v3365_v28 = vrot.slane %v1158_v25, %v3105_v48 }
 0x253   :  { %v978_v33 = vadd.f32 %v977_v31, %v3216_v44  ;;  %1502 = vmatprep.mubr.bf16.mxu0 %v1117_v29  ;;  %v1073_v39 = vmax.f32 %v976_v32, 0.0 }
 0x254   :  { %v979_v35 = vpop.f32.mrf.mxu1  ;;  %1503 = vmatmul.mubr.bf16.gmra.mxu0 %v1116_v30 }
 0x255   :  { %v980_v36 = vadd.f32 %v979_v35, %v3213_v43  ;;  %v1074_v37 = vmax.f32 %v978_v33, 0.0 }
 0x256   :  { %v983_v38 = vpop.f32.mrf.mxu1 }
 0x257   :  { %v1075_v0 = vmax.f32 %v980_v36, 0.0  ;;  %v1118_v41 = vpack.c.bf16 %v1074_v37, %v1072_v54  ;;  %v984_v49 = vadd.f32 %v983_v38, %v3216_v44 }
 0x258   :  { %v985_v51 = vpop.f32.mrf.mxu1 }
 0x259   :  { %v1119_v40 = vpack.c.bf16 %v1075_v0, %v1073_v39  ;;  %v986_v45 = vadd.f32 %v985_v51, %v3213_v43  ;;  %v1076_v58 = vmax.f32 %v984_v49, 0.0 }
 0x25a   :  { %v987_v42 = vpop.f32.mrf.mxu1 }
 0x25b   :  { %v988_v46 = vadd.f32 %v987_v42, %v3216_v44  ;;  %1512 = vmatprep.mubr.bf16.mxu0 %v1119_v40  ;;  %v1077_v56 = vmax.f32 %v986_v45, 0.0 }
 0x25c   :  { %v989_v50 = vpop.f32.mrf.mxu1  ;;  %1513 = vmatmul.mubr.bf16.gmra.mxu0 %v1118_v41 }
 0x25d   :  { %v990_v52 = vadd.f32 %v989_v50, %v3213_v43  ;;  %v1078_v53 = vmax.f32 %v988_v46, 0.0 }
 0x25e   :  { %v993_v55 = vpop.f32.mrf.mxu1 }
 0x25f   :  { %v1079_v57 = vmax.f32 %v990_v52, 0.0  ;;  %v1120_v61 = vpack.c.bf16 %v1078_v53, %v1076_v58  ;;  %v994_v2 = vadd.f32 %v993_v55, %v3216_v44 }
 0x260   :  { %v995_v59 = vpop.f32.mrf.mxu1 }
 0x261   :  { %v1121_v60 = vpack.c.bf16 %v1079_v57, %v1077_v56  ;;  %v996_v63 = vadd.f32 %v995_v59, %v3213_v43  ;;  %v1080_v9 = vmax.f32 %v994_v2, 0.0 }
 0x262   :  { %v997_v62 = vpop.f32.mrf.mxu1 }
 0x263   :  { %v998_v1 = vadd.f32 %v997_v62, %v3216_v44  ;;  %1522 = vmatprep.mubr.bf16.mxu0 %v1121_v60  ;;  %v1081_v7 = vmax.f32 %v996_v63, 0.0 }
 0x264   :  { %v999_v3 = vpop.f32.mrf.mxu1  ;;  %1523 = vmatmul.mubr.bf16.gmra.mxu0 %v1120_v61 }
 0x265   :  { %v1000_v4 = vadd.f32 %v999_v3, %v3213_v43  ;;  %v1082_v5 = vmax.f32 %v998_v1, 0.0 }
 0x266   :  { %v1003_v6 = vpop.f32.mrf.mxu1 }
 0x267   :  { %v1083_v8 = vmax.f32 %v1000_v4, 0.0  ;;  %v1122_v12 = vpack.c.bf16 %v1082_v5, %v1080_v9  ;;  %v1004_v16 = vadd.f32 %v1003_v6, %v3216_v44 }
 0x268   :  { %v1005_v10 = vpop.f32.mrf.mxu1 }
 0x269   :  { %v1123_v11 = vpack.c.bf16 %v1083_v8, %v1081_v7  ;;  %v1006_v14 = vadd.f32 %v1005_v10, %v3213_v43  ;;  %v1084_v22 = vmax.f32 %v1004_v16, 0.0 }
 0x26a   :  { %v1007_v13 = vpop.f32.mrf.mxu1 }
 0x26b   :  { %v1008_v15 = vadd.f32 %v1007_v13, %v3216_v44  ;;  %1532 = vmatprep.mubr.bf16.mxu0 %v1123_v11  ;;  %v1085_v20 = vmax.f32 %v1006_v14, 0.0 }
 0x26c   :  { %v1009_v17 = vpop.f32.mrf.mxu1  ;;  %1533 = vmatmul.mubr.bf16.gmra.mxu0 %v1122_v12 }
 0x26d   :  { %v1010_v18 = vadd.f32 %v1009_v17, %v3213_v43  ;;  %v1086_v19 = vmax.f32 %v1008_v15, 0.0 }
 0x26f   :  { %v1087_v21 = vmax.f32 %v1010_v18, 0.0  ;;  %v1124_v24 = vpack.c.bf16 %v1086_v19, %v1084_v22 }
 0x271   :  { %v1125_v23 = vpack.c.bf16 %v1087_v21, %v1085_v20 }
 0x273   :  { %1542 = vmatprep.mubr.bf16.mxu0 %v1125_v23 }
 0x274   :  { %1543 = vmatmul.mubr.bf16.gmra.mxu0 %v1124_v24 }
 0x2a4   :  { %v1364_v26 = vpop.f32.mrf.mxu0 }
 0x2a5   :  { %v1365_v31 = vadd.f32 %v1364_v26, %v3365_v28 }
 0x2a6   :  { %v1366_v44 = vpop.f32.mrf.mxu0 }
 0x2a7   :  { %v1367_v43 = vadd.f32 %v1366_v44, %v3362_v27  ;;  %v1553_v47 = vmax.f32 %v1365_v31, 0.0 }
 0x2a8   :  { %v1368_v29 = vpop.f32.mrf.mxu0 }
 0x2a9   :  { %v1369_v30 = vadd.f32 %v1368_v29, %v3365_v28  ;;  %v1554_v36 = vmax.f32 %v1367_v43, 0.0 }
 0x2aa   :  { %v1370_v32 = vpop.f32.mrf.mxu0 }
 0x2ab   :  { %v1371_v33 = vadd.f32 %v1370_v32, %v3362_v27  ;;  %v1555_v34 = vmax.f32 %v1369_v30, 0.0 }
 0x2ac   :  { %v1374_v35 = vpop.f32.mrf.mxu0 }
 0x2ad   :  { %v1556_v37 = vmax.f32 %v1371_v33, 0.0  ;;  %v1629_v48 = vpack.c.bf16 %v1555_v34, %v1553_v47  ;;  %v1375_v40 = vadd.f32 %v1374_v35, %v3365_v28 }
 0x2ae   :  { %v1376_v38 = vpop.f32.mrf.mxu0 }
 0x2af   :  { %v1630_v39 = vpack.c.bf16 %v1556_v37, %v1554_v36  ;;  %v1377_v54 = vadd.f32 %v1376_v38, %v3362_v27  ;;  %v1557_v52 = vmax.f32 %v1375_v40, 0.0 }
 0x2b0   :  { %v1378_v0 = vpop.f32.mrf.mxu0 }
 0x2b1   :  { %v1379_v51 = vadd.f32 %v1378_v0, %v3365_v28  ;;  %1834 = vmatprep.mubr.bf16.mxu0 %v1630_v39  ;;  %v1558_v49 = vmax.f32 %v1377_v54, 0.0 }
 0x2b2   :  { %v1380_v41 = vpop.f32.mrf.mxu0  ;;  %1835 = vmatmul.mubr.bf16.vlgmr.msra.gmra.mxu0 %v1629_v48 }
 0x2b3   :  { %v1381_v42 = vadd.f32 %v1380_v41, %v3362_v27  ;;  %v1559_v45 = vmax.f32 %v1379_v51, 0.0 }
 0x2b4   :  { %v1384_v46 = vpop.f32.mrf.mxu0 }
 0x2b5   :  { %v1560_v50 = vmax.f32 %v1381_v42, 0.0  ;;  %v1631_v56 = vpack.c.bf16 %v1559_v45, %v1557_v52  ;;  %v1385_v60 = vadd.f32 %v1384_v46, %v3365_v28 }
 0x2b6   :  { %v1386_v53 = vpop.f32.mrf.mxu0 }
 0x2b7   :  { %v1632_v55 = vpack.c.bf16 %v1560_v50, %v1558_v49  ;;  %v1387_v58 = vadd.f32 %v1386_v53, %v3362_v27  ;;  %v1561_v4 = vmax.f32 %v1385_v60, 0.0 }
 0x2b8   :  { %v1388_v57 = vpop.f32.mrf.mxu0 }
 0x2b9   :  { %v1389_v59 = vadd.f32 %v1388_v57, %v3365_v28  ;;  %1842 = vmatprep.mubr.bf16.mxu0 %v1632_v55  ;;  %v1562_v2 = vmax.f32 %v1387_v58, 0.0 }
 0x2ba   :  { %v1390_v61 = vpop.f32.mrf.mxu0  ;;  %1843 = vmatmul.mubr.bf16.gmra.mxu0 %v1631_v56 }
 0x2bb   :  { %v1391_v62 = vadd.f32 %v1390_v61, %v3362_v27  ;;  %v1563_v63 = vmax.f32 %v1389_v59, 0.0 }
 0x2bc   :  { %v1394_v1 = vpop.f32.mrf.mxu0 }
 0x2bd   :  { %v1564_v3 = vmax.f32 %v1391_v62, 0.0  ;;  %v1633_v7 = vpack.c.bf16 %v1563_v63, %v1561_v4  ;;  %v1395_v11 = vadd.f32 %v1394_v1, %v3365_v28 }
 0x2be   :  { %v1396_v5 = vpop.f32.mrf.mxu0 }
 0x2bf   :  { %v1634_v6 = vpack.c.bf16 %v1564_v3, %v1562_v2  ;;  %v1397_v9 = vadd.f32 %v1396_v5, %v3362_v27  ;;  %v1565_v18 = vmax.f32 %v1395_v11, 0.0 }
 0x2c0   :  { %v1398_v8 = vpop.f32.mrf.mxu0 }
 0x2c1   :  { %v1399_v10 = vadd.f32 %v1398_v8, %v3365_v28  ;;  %1850 = vmatprep.mubr.bf16.mxu0 %v1634_v6  ;;  %v1566_v16 = vmax.f32 %v1397_v9, 0.0 }
 0x2c2   :  { %v1400_v12 = vpop.f32.mrf.mxu0  ;;  %1851 = vmatmul.mubr.bf16.gmra.mxu0 %v1633_v7 }
 0x2c3   :  { %v1401_v13 = vadd.f32 %v1400_v12, %v3362_v27  ;;  %v1567_v14 = vmax.f32 %v1399_v10, 0.0 }
 0x2c4   :  { %v1404_v15 = vpop.f32.mrf.mxu0 }
 0x2c5   :  { %v1568_v17 = vmax.f32 %v1401_v13, 0.0  ;;  %v1635_v21 = vpack.c.bf16 %v1567_v14, %v1565_v18  ;;  %v1405_v25 = vadd.f32 %v1404_v15, %v3365_v28 }
 0x2c6   :  { %v1406_v19 = vpop.f32.mrf.mxu0 }
 0x2c7   :  { %v1636_v20 = vpack.c.bf16 %v1568_v17, %v1566_v16  ;;  %v1407_v23 = vadd.f32 %v1406_v19, %v3362_v27  ;;  %v1569_v32 = vmax.f32 %v1405_v25, 0.0 }
 0x2c8   :  { %v1408_v22 = vpop.f32.mrf.mxu0 }
 0x2c9   :  { %v1409_v24 = vadd.f32 %v1408_v22, %v3365_v28  ;;  %1858 = vmatprep.mubr.bf16.mxu1 %v1636_v20  ;;  %v1570_v30 = vmax.f32 %v1407_v23, 0.0 }
 0x2ca   :  { %v1410_v26 = vpop.f32.mrf.mxu0  ;;  %1859 = vmatmul.mubr.bf16.vlgmr.msra.gmra.mxu1 %v1635_v21 }
 0x2cb   :  { %v1411_v44 = vadd.f32 %v1410_v26, %v3362_v27  ;;  %v1571_v29 = vmax.f32 %v1409_v24, 0.0 }
 0x2cc   :  { %v1414_v43 = vpop.f32.mrf.mxu0 }
 0x2cd   :  { %v1572_v31 = vmax.f32 %v1411_v44, 0.0  ;;  %v1637_v35 = vpack.c.bf16 %v1571_v29, %v1569_v32  ;;  %v1415_v38 = vadd.f32 %v1414_v43, %v3365_v28 }
 0x2ce   :  { %v1416_v33 = vpop.f32.mrf.mxu0 }
 0x2cf   :  { %v1638_v34 = vpack.c.bf16 %v1572_v31, %v1570_v30  ;;  %v1417_v37 = vadd.f32 %v1416_v33, %v3362_v27  ;;  %v1573_v41 = vmax.f32 %v1415_v38, 0.0 }
 0x2d0   :  { %v1418_v36 = vpop.f32.mrf.mxu0 }
 0x2d1   :  { %v1419_v47 = vadd.f32 %v1418_v36, %v3365_v28  ;;  %1866 = vmatprep.mubr.bf16.mxu1 %v1638_v34  ;;  %v1574_v51 = vmax.f32 %v1417_v37, 0.0 }
 0x2d2   :  { %v1420_v39 = vpop.f32.mrf.mxu0  ;;  %1867 = vmatmul.mubr.bf16.gmra.mxu1 %v1637_v35 }
 0x2d3   :  { %v1421_v48 = vadd.f32 %v1420_v39, %v3362_v27  ;;  %v1575_v0 = vmax.f32 %v1419_v47, 0.0 }
 0x2d4   :  { %v1424_v54 = vpop.f32.mrf.mxu0 }
 0x2d5   :  { %v1576_v40 = vmax.f32 %v1421_v48, 0.0  ;;  %v1639_v46 = vpack.c.bf16 %v1575_v0, %v1573_v41  ;;  %v1425_v53 = vadd.f32 %v1424_v54, %v3365_v28 }
 0x2d6   :  { %v1426_v42 = vpop.f32.mrf.mxu0 }
 0x2d7   :  { %v1640_v45 = vpack.c.bf16 %v1576_v40, %v1574_v51  ;;  %v1427_v50 = vadd.f32 %v1426_v42, %v3362_v27  ;;  %v1577_v61 = vmax.f32 %v1425_v53, 0.0 }
 0x2d8   :  { %v1428_v49 = vpop.f32.mrf.mxu0 }
 0x2d9   :  { %v1429_v52 = vadd.f32 %v1428_v49, %v3365_v28  ;;  %1874 = vmatprep.mubr.bf16.mxu1 %v1640_v45  ;;  %v1578_v59 = vmax.f32 %v1427_v50, 0.0 }
 0x2da   :  { %v1430_v55 = vpop.f32.mrf.mxu0  ;;  %1875 = vmatmul.mubr.bf16.gmra.mxu1 %v1639_v46 }
 0x2db   :  { %v1431_v56 = vadd.f32 %v1430_v55, %v3362_v27  ;;  %v1579_v57 = vmax.f32 %v1429_v52, 0.0 }
 0x2dc   :  { %v1434_v58 = vpop.f32.mrf.mxu0 }
 0x2dd   :  { %v1580_v60 = vmax.f32 %v1431_v56, 0.0  ;;  %v1641_v1 = vpack.c.bf16 %v1579_v57, %v1577_v61  ;;  %v1435_v5 = vadd.f32 %v1434_v58, %v3365_v28 }
 0x2de   :  { %v1436_v62 = vpop.f32.mrf.mxu0 }
 0x2df   :  { %v1642_v63 = vpack.c.bf16 %v1580_v60, %v1578_v59  ;;  %v1437_v3 = vadd.f32 %v1436_v62, %v3362_v27  ;;  %v1581_v12 = vmax.f32 %v1435_v5, 0.0 }
 0x2e0   :  { %v1438_v2 = vpop.f32.mrf.mxu0 }
 0x2e1   :  { %v1439_v4 = vadd.f32 %v1438_v2, %v3365_v28  ;;  %1882 = vmatprep.mubr.bf16.mxu1 %v1642_v63  ;;  %v1582_v10 = vmax.f32 %v1437_v3, 0.0 }
 0x2e2   :  { %v1440_v6 = vpop.f32.mrf.mxu0  ;;  %1883 = vmatmul.mubr.bf16.gmra.mxu1 %v1641_v1 }
 0x2e3   :  { %v1441_v7 = vadd.f32 %v1440_v6, %v3362_v27  ;;  %v1583_v8 = vmax.f32 %v1439_v4, 0.0 }
 0x2e4   :  { %v1444_v9 = vpop.f32.mrf.mxu0 }
 0x2e5   :  { %v1584_v11 = vmax.f32 %v1441_v7, 0.0  ;;  %v1643_v15 = vpack.c.bf16 %v1583_v8, %v1581_v12  ;;  %v1445_v19 = vadd.f32 %v1444_v9, %v3365_v28 }
 0x2e6   :  { %v1446_v13 = vpop.f32.mrf.mxu0 }
 0x2e7   :  { %v1644_v14 = vpack.c.bf16 %v1584_v11, %v1582_v10  ;;  %v1447_v17 = vadd.f32 %v1446_v13, %v3362_v27  ;;  %v1585_v26 = vmax.f32 %v1445_v19, 0.0 }
 0x2e8   :  { %v1448_v16 = vpop.f32.mrf.mxu0 }
 0x2e9   :  { %v1449_v18 = vadd.f32 %v1448_v16, %v3365_v28  ;;  %1890 = vmatprep.mubr.bf16.mxu1 %v1644_v14  ;;  %v1586_v24 = vmax.f32 %v1447_v17, 0.0 }
 0x2ea   :  { %v1450_v20 = vpop.f32.mrf.mxu0  ;;  %1891 = vmatmul.mubr.bf16.gmra.mxu1 %v1643_v15 }
 0x2eb   :  { %v1451_v21 = vadd.f32 %v1450_v20, %v3362_v27  ;;  %v1587_v22 = vmax.f32 %v1449_v18, 0.0 }
 0x2ec   :  { %v1454_v23 = vpop.f32.mrf.mxu0 }
 0x2ed   :  { %v1588_v25 = vmax.f32 %v1451_v21, 0.0  ;;  %v1645_v43 = vpack.c.bf16 %v1587_v22, %v1585_v26  ;;  %v1455_v33 = vadd.f32 %v1454_v23, %v3365_v28 }
 0x2ee   :  { %v1456_v44 = vpop.f32.mrf.mxu0 }
 0x2ef   :  { %v1646_v29 = vpack.c.bf16 %v1588_v25, %v1586_v24  ;;  %v1457_v31 = vadd.f32 %v1456_v44, %v3362_v27  ;;  %v1589_v39 = vmax.f32 %v1455_v33, 0.0 }
 0x2f0   :  { %v1458_v30 = vpop.f32.mrf.mxu0 }
 0x2f1   :  { %v1459_v32 = vadd.f32 %v1458_v30, %v3365_v28  ;;  %1898 = vmatprep.mubr.bf16.mxu1 %v1646_v29  ;;  %v1590_v47 = vmax.f32 %v1457_v31, 0.0 }
 0x2f2   :  { %v1460_v34 = vpop.f32.mrf.mxu0  ;;  %1899 = vmatmul.mubr.bf16.gmra.mxu1 %v1645_v43 }
 0x2f3   :  { %v1461_v35 = vadd.f32 %v1460_v34, %v3362_v27  ;;  %v1591_v36 = vmax.f32 %v1459_v32, 0.0 }
 0x2f4   :  { %v1464_v37 = vpop.f32.mrf.mxu0 }
 0x2f5   :  { %v1592_v38 = vmax.f32 %v1461_v35, 0.0  ;;  %v1647_v54 = vpack.c.bf16 %v1591_v36, %v1589_v39  ;;  %v1465_v42 = vadd.f32 %v1464_v37, %v3365_v28 }
 0x2f6   :  { %v1466_v48 = vpop.f32.mrf.mxu0 }
 0x2f7   :  { %v1648_v0 = vpack.c.bf16 %v1592_v38, %v1590_v47  ;;  %v1467_v40 = vadd.f32 %v1466_v48, %v3362_v27  ;;  %v1593_v55 = vmax.f32 %v1465_v42, 0.0 }
 0x2f8   :  { %v1468_v51 = vpop.f32.mrf.mxu0 }
 0x2f9   :  { %v1469_v41 = vadd.f32 %v1468_v51, %v3365_v28  ;;  %1906 = vmatprep.mubr.bf16.mxu1 %v1648_v0  ;;  %v1594_v52 = vmax.f32 %v1467_v40, 0.0 }
 0x2fa   :  { %v1470_v45 = vpop.f32.mrf.mxu0  ;;  %1907 = vmatmul.mubr.bf16.gmra.mxu1 %v1647_v54 }
 0x2fb   :  { %v1471_v46 = vadd.f32 %v1470_v45, %v3362_v27  ;;  %v1595_v49 = vmax.f32 %v1469_v41, 0.0 }
 0x2fc   :  { %v1474_v50 = vpop.f32.mrf.mxu0 }
 0x2fd   :  { %v1596_v53 = vmax.f32 %v1471_v46, 0.0  ;;  %v1649_v58 = vpack.c.bf16 %v1595_v49, %v1593_v55  ;;  %v1475_v62 = vadd.f32 %v1474_v50, %v3365_v28 }
 0x2fe   :  { %v1476_v56 = vpop.f32.mrf.mxu0 }
 0x2ff   :  { %v1650_v57 = vpack.c.bf16 %v1596_v53, %v1594_v52  ;;  %v1477_v60 = vadd.f32 %v1476_v56, %v3362_v27  ;;  %v1597_v6 = vmax.f32 %v1475_v62, 0.0 }
 0x300   :  { %v1478_v59 = vpop.f32.mrf.mxu0 }
 0x301   :  { %v1479_v61 = vadd.f32 %v1478_v59, %v3365_v28  ;;  %1914 = vmatprep.mubr.bf16.mxu1 %v1650_v57  ;;  %v1598_v4 = vmax.f32 %v1477_v60, 0.0 }
 0x302   :  { %v1480_v63 = vpop.f32.mrf.mxu0  ;;  %1915 = vmatmul.mubr.bf16.gmra.mxu1 %v1649_v58 }
 0x303   :  { %v1481_v1 = vadd.f32 %v1480_v63, %v3362_v27  ;;  %v1599_v2 = vmax.f32 %v1479_v61, 0.0 }
 0x304   :  { %v1484_v3 = vpop.f32.mrf.mxu0 }
 0x305   :  { %v1600_v5 = vmax.f32 %v1481_v1, 0.0  ;;  %v1651_v9 = vpack.c.bf16 %v1599_v2, %v1597_v6  ;;  %v1485_v13 = vadd.f32 %v1484_v3, %v3365_v28 }
 0x306   :  { %v1486_v7 = vpop.f32.mrf.mxu0 }
 0x307   :  { %v1652_v8 = vpack.c.bf16 %v1600_v5, %v1598_v4  ;;  %v1487_v11 = vadd.f32 %v1486_v7, %v3362_v27  ;;  %v1601_v20 = vmax.f32 %v1485_v13, 0.0 }
 0x308   :  { %v1488_v10 = vpop.f32.mrf.mxu0 }
 0x309   :  { %v1489_v12 = vadd.f32 %v1488_v10, %v3365_v28  ;;  %1922 = vmatprep.mubr.bf16.mxu1 %v1652_v8  ;;  %v1602_v18 = vmax.f32 %v1487_v11, 0.0 }
 0x30a   :  { %v1490_v14 = vpop.f32.mrf.mxu0  ;;  %1923 = vmatmul.mubr.bf16.gmra.mxu1 %v1651_v9 }
 0x30b   :  { %v1491_v15 = vadd.f32 %v1490_v14, %v3362_v27  ;;  %v1603_v16 = vmax.f32 %v1489_v12, 0.0 }
 0x30c   :  { %v1494_v17 = vpop.f32.mrf.mxu0 }
 0x30d   :  { %v1604_v19 = vmax.f32 %v1491_v15, 0.0  ;;  %v1653_v23 = vpack.c.bf16 %v1603_v16, %v1601_v20  ;;  %v1495_v44 = vadd.f32 %v1494_v17, %v3365_v28 }
 0x30e   :  { %v1496_v21 = vpop.f32.mrf.mxu0 }
 0x30f   :  { %v1654_v22 = vpack.c.bf16 %v1604_v19, %v1602_v18  ;;  %v1497_v25 = vadd.f32 %v1496_v21, %v3362_v27  ;;  %v1605_v34 = vmax.f32 %v1495_v44, 0.0 }
 0x310   :  { %v1498_v24 = vpop.f32.mrf.mxu0 }
 0x311   :  { %v1499_v26 = vadd.f32 %v1498_v24, %v3365_v28  ;;  %1930 = vmatprep.mubr.bf16.mxu1 %v1654_v22  ;;  %v1606_v32 = vmax.f32 %v1497_v25, 0.0 }
 0x312   :  { %v1500_v29 = vpop.f32.mrf.mxu0  ;;  %1931 = vmatmul.mubr.bf16.gmra.mxu1 %v1653_v23 }
 0x313   :  { %v1501_v43 = vadd.f32 %v1500_v29, %v3362_v27  ;;  %v1607_v30 = vmax.f32 %v1499_v26, 0.0 }
 0x314   :  { %v1504_v31 = vpop.f32.mrf.mxu0 }
 0x315   :  { %v1608_v33 = vmax.f32 %v1501_v43, 0.0  ;;  %v1655_v37 = vpack.c.bf16 %v1607_v30, %v1605_v34  ;;  %v1505_v48 = vadd.f32 %v1504_v31, %v3365_v28 }
 0x316   :  { %v1506_v35 = vpop.f32.mrf.mxu0 }
 0x317   :  { %v1656_v36 = vpack.c.bf16 %v1608_v33, %v1606_v32  ;;  %v1507_v38 = vadd.f32 %v1506_v35, %v3362_v27  ;;  %v1609_v45 = vmax.f32 %v1505_v48, 0.0 }
 0x318   :  { %v1508_v47 = vpop.f32.mrf.mxu0 }
 0x319   :  { %v1509_v39 = vadd.f32 %v1508_v47, %v3365_v28  ;;  %1938 = vmatprep.mubr.bf16.mxu1 %v1656_v36  ;;  %v1610_v41 = vmax.f32 %v1507_v38, 0.0 }
 0x31a   :  { %v1510_v0 = vpop.f32.mrf.mxu0  ;;  %1939 = vmatmul.mubr.bf16.gmra.mxu1 %v1655_v37 }
 0x31b   :  { %v1511_v54 = vadd.f32 %v1510_v0, %v3362_v27  ;;  %v1611_v51 = vmax.f32 %v1509_v39, 0.0 }
 0x31c   :  { %v1514_v40 = vpop.f32.mrf.mxu0 }
 0x31d   :  { %v1612_v42 = vmax.f32 %v1511_v54, 0.0  ;;  %v1657_v50 = vpack.c.bf16 %v1611_v51, %v1609_v45  ;;  %v1515_v56 = vadd.f32 %v1514_v40, %v3365_v28  ;;  %v3443_v40 = vld [vmem:[#allocation10] ss:$0 sm:$0xff] }
 0x31e   :  { %v1516_v46 = vpop.f32.mrf.mxu0 }
 0x31f   :  { %v1658_v49 = vpack.c.bf16 %v1612_v42, %v1610_v41  ;;  %v1517_v53 = vadd.f32 %v1516_v46, %v3362_v27  ;;  %v1613_v63 = vmax.f32 %v1515_v56, 0.0 }
 0x320   :  { %v1518_v52 = vpop.f32.mrf.mxu0 }
 0x321   :  { %v1519_v55 = vadd.f32 %v1518_v52, %v3365_v28  ;;  %1946 = vmatprep.mubr.bf16.mxu1 %v1658_v49  ;;  %v1614_v61 = vmax.f32 %v1517_v53, 0.0 }
 0x322   :  { %v1520_v57 = vpop.f32.mrf.mxu0  ;;  %1947 = vmatmul.mubr.bf16.gmra.mxu1 %v1657_v50 }
 0x323   :  { %v1521_v58 = vadd.f32 %v1520_v57, %v3362_v27  ;;  %v1615_v59 = vmax.f32 %v1519_v55, 0.0 }
 0x324   :  { %v1524_v60 = vpop.f32.mrf.mxu0 }
 0x325   :  { %v1616_v62 = vmax.f32 %v1521_v58, 0.0  ;;  %v1659_v3 = vpack.c.bf16 %v1615_v59, %v1613_v63  ;;  %v1525_v7 = vadd.f32 %v1524_v60, %v3365_v28 }
 0x326   :  { %v1526_v1 = vpop.f32.mrf.mxu0 }
 0x327   :  { %v1660_v2 = vpack.c.bf16 %v1616_v62, %v1614_v61  ;;  %v1527_v5 = vadd.f32 %v1526_v1, %v3362_v27  ;;  %v1617_v14 = vmax.f32 %v1525_v7, 0.0 }
 0x328   :  { %v1528_v4 = vpop.f32.mrf.mxu0 }
 0x329   :  { %v1529_v6 = vadd.f32 %v1528_v4, %v3365_v28  ;;  %1954 = vmatprep.mubr.bf16.mxu1 %v1660_v2  ;;  %v1618_v12 = vmax.f32 %v1527_v5, 0.0 }
 0x32a   :  { %v1530_v8 = vpop.f32.mrf.mxu0  ;;  %1955 = vmatmul.mubr.bf16.gmra.mxu1 %v1659_v3 }
 0x32b   :  { %v1531_v9 = vadd.f32 %v1530_v8, %v3362_v27  ;;  %v1619_v10 = vmax.f32 %v1529_v6, 0.0 }
 0x32c   :  { %v1534_v11 = vpop.f32.mrf.mxu0 }
 0x32d   :  { %v1620_v13 = vmax.f32 %v1531_v9, 0.0  ;;  %v1661_v17 = vpack.c.bf16 %v1619_v10, %v1617_v14  ;;  %v1535_v21 = vadd.f32 %v1534_v11, %v3365_v28 }
 0x32e   :  { %v1536_v15 = vpop.f32.mrf.mxu0 }
 0x32f   :  { %v1662_v16 = vpack.c.bf16 %v1620_v13, %v1618_v12  ;;  %v1537_v19 = vadd.f32 %v1536_v15, %v3362_v27  ;;  %v1621_v29 = vmax.f32 %v1535_v21, 0.0 }
 0x330   :  { %v1538_v18 = vpop.f32.mrf.mxu0 }
 0x331   :  { %v1539_v20 = vadd.f32 %v1538_v18, %v3365_v28  ;;  %1962 = vmatprep.mubr.bf16.mxu1 %v1662_v16  ;;  %v1622_v26 = vmax.f32 %v1537_v19, 0.0 }
 0x332   :  { %v1540_v22 = vpop.f32.mrf.mxu0  ;;  %1963 = vmatmul.mubr.bf16.gmra.mxu1 %v1661_v17 }
 0x333   :  { %v1541_v23 = vadd.f32 %v1540_v22, %v3362_v27  ;;  %v1623_v24 = vmax.f32 %v1539_v20, 0.0 }
 0x334   :  { %v1544_v25 = vpop.f32.mrf.mxu0 }
 0x335   :  { %v1624_v44 = vmax.f32 %v1541_v23, 0.0  ;;  %v1663_v31 = vpack.c.bf16 %v1623_v24, %v1621_v29  ;;  %v1545_v35 = vadd.f32 %v1544_v25, %v3365_v28 }
 0x336   :  { %v1546_v43 = vpop.f32.mrf.mxu0 }
 0x337   :  { %v1664_v30 = vpack.c.bf16 %v1624_v44, %v1622_v26  ;;  %v1547_v33 = vadd.f32 %v1546_v43, %v3362_v27  ;;  %v1625_v48 = vmax.f32 %v1545_v35, 0.0 }
 0x338   :  { %v1548_v32 = vpop.f32.mrf.mxu0 }
 0x339   :  { %v1549_v34 = vadd.f32 %v1548_v32, %v3365_v28  ;;  %1970 = vmatprep.mubr.bf16.mxu1 %v1664_v30  ;;  %v1626_v38 = vmax.f32 %v1547_v33, 0.0 }
 0x33a   :  { %v1550_v36 = vpop.f32.mrf.mxu0  ;;  %1971 = vmatmul.mubr.bf16.gmra.mxu1 %v1663_v31 }
 0x33b   :  { %v1551_v37 = vadd.f32 %v1550_v36, %v3362_v27  ;;  %v1627_v47 = vmax.f32 %v1549_v34, 0.0 }
 0x33d   :  { %v1628_v39 = vmax.f32 %v1551_v37, 0.0  ;;  %v1665_v54 = vpack.c.bf16 %v1627_v47, %v1625_v48 }
 0x33f   :  { %v1666_v0 = vpack.c.bf16 %v1628_v39, %v1626_v38 }
 0x341   :  { %1978 = vmatprep.mubr.bf16.mxu1 %v1666_v0 }
 0x342   :  { %1979 = vmatmul.mubr.bf16.gmra.mxu1 %v1665_v54 }
 0x372   :  { %v1836_v51 = vpop.f32.mrf.mxu0 }
 0x373   :  { %v1837_v45 = vadd.f32 %v3443_v40, %v1836_v51 }
 0x374   :  { %v1838_v41 = vpop.f32.mrf.mxu0 }
 0x376   :  { %v1839_v42 = vpop.f32.mrf.mxu0 }
 0x377   :  { %v1840_v28 = vadd.f32 %v3443_v40, %v1839_v42 }
 0x378   :  { %v1841_v46 = vpop.f32.mrf.mxu0 }
 0x379   :  { %v2380_v49 = vpack.c.bf16 %v1840_v28, %v1837_v45 }
 0x37a   :  { %v1844_v27 = vpop.f32.mrf.mxu0 }
 0x37b   :  { %2381 = vst [vmem:[#allocation11] sm:$0xff] %v2380_v49   ;;  %v1845_v53 = vadd.f32 %v3443_v40, %v1844_v27 }
 0x37c   :  { %v1846_v50 = vpop.f32.mrf.mxu0 }
 0x37e   :  { %v1847_v52 = vpop.f32.mrf.mxu0 }
 0x37f   :  { %v1848_v55 = vadd.f32 %v3443_v40, %v1847_v52 }
 0x380   :  { %v1849_v56 = vpop.f32.mrf.mxu0 }
 0x381   :  { %v2385_v57 = vpack.c.bf16 %v1848_v55, %v1845_v53 }
 0x382   :  { %v1852_v58 = vpop.f32.mrf.mxu0 }
 0x383   :  { %2472 = vst [vmem:[#allocation11 + $0x8] sm:$0xff] %v2385_v57   ;;  %v1853_v61 = vadd.f32 %v3443_v40, %v1852_v58 }
 0x384   :  { %v1854_v59 = vpop.f32.mrf.mxu0 }
 0x386   :  { %v1855_v60 = vpop.f32.mrf.mxu0 }
 0x387   :  { %v1856_v62 = vadd.f32 %v3443_v40, %v1855_v60 }
 0x388   :  { %v1857_v63 = vpop.f32.mrf.mxu0 }
 0x389   :  { %v2390_v1 = vpack.c.bf16 %v1856_v62, %v1853_v61 }
 0x38a   :  { %v1860_v2 = vpop.f32.mrf.mxu1 }
 0x38b   :  { %2473 = vst [vmem:[#allocation11 + $0x10] sm:$0xff] %v2390_v1   ;;  %v1861_v5 = vadd.f32 %v3443_v40, %v1860_v2 }
 0x38c   :  { %v1862_v3 = vpop.f32.mrf.mxu1 }
 0x38e   :  { %v1863_v4 = vpop.f32.mrf.mxu1 }
 0x38f   :  { %v1864_v6 = vadd.f32 %v3443_v40, %v1863_v4 }
 0x390   :  { %v1865_v7 = vpop.f32.mrf.mxu1 }
 0x391   :  { %v2395_v8 = vpack.c.bf16 %v1864_v6, %v1861_v5 }
 0x392   :  { %v1868_v9 = vpop.f32.mrf.mxu1 }
 0x393   :  { %2474 = vst [vmem:[#allocation11 + $0x18] sm:$0xff] %v2395_v8   ;;  %v1869_v12 = vadd.f32 %v3443_v40, %v1868_v9 }
 0x394   :  { %v1870_v10 = vpop.f32.mrf.mxu1 }
 0x396   :  { %v1871_v11 = vpop.f32.mrf.mxu1 }
 0x397   :  { %v1872_v13 = vadd.f32 %v3443_v40, %v1871_v11 }
 0x398   :  { %v1873_v14 = vpop.f32.mrf.mxu1 }
 0x399   :  { %v2400_v15 = vpack.c.bf16 %v1872_v13, %v1869_v12 }
 0x39a   :  { %v1876_v16 = vpop.f32.mrf.mxu1 }
 0x39b   :  { %2475 = vst [vmem:[#allocation11 + $0x20] sm:$0xff] %v2400_v15   ;;  %v1877_v19 = vadd.f32 %v3443_v40, %v1876_v16 }
 0x39c   :  { %v1878_v17 = vpop.f32.mrf.mxu1 }
 0x39e   :  { %v1879_v18 = vpop.f32.mrf.mxu1 }
 0x39f   :  { %v1880_v20 = vadd.f32 %v3443_v40, %v1879_v18 }
 0x3a0   :  { %v1881_v21 = vpop.f32.mrf.mxu1 }
 0x3a1   :  { %v2405_v22 = vpack.c.bf16 %v1880_v20, %v1877_v19 }
 0x3a2   :  { %v1884_v23 = vpop.f32.mrf.mxu1 }
 0x3a3   :  { %2476 = vst [vmem:[#allocation11 + $0x28] sm:$0xff] %v2405_v22   ;;  %v1885_v26 = vadd.f32 %v3443_v40, %v1884_v23 }
 0x3a4   :  { %v1886_v24 = vpop.f32.mrf.mxu1 }
 0x3a6   :  { %v1887_v25 = vpop.f32.mrf.mxu1 }
 0x3a7   :  { %v1888_v44 = vadd.f32 %v3443_v40, %v1887_v25 }
 0x3a8   :  { %v1889_v29 = vpop.f32.mrf.mxu1 }
 0x3a9   :  { %v2410_v43 = vpack.c.bf16 %v1888_v44, %v1885_v26 }
 0x3aa   :  { %v1892_v30 = vpop.f32.mrf.mxu1 }
 0x3ab   :  { %2477 = vst [vmem:[#allocation11 + $0x30] sm:$0xff] %v2410_v43   ;;  %v1893_v33 = vadd.f32 %v3443_v40, %v1892_v30 }
 0x3ac   :  { %v1894_v31 = vpop.f32.mrf.mxu1 }
 0x3ae   :  { %v1895_v32 = vpop.f32.mrf.mxu1 }
 0x3af   :  { %v1896_v34 = vadd.f32 %v3443_v40, %v1895_v32 }
 0x3b0   :  { %v1897_v35 = vpop.f32.mrf.mxu1 }
 0x3b1   :  { %v2415_v36 = vpack.c.bf16 %v1896_v34, %v1893_v33 }
 0x3b2   :  { %v1900_v37 = vpop.f32.mrf.mxu1 }
 0x3b3   :  { %2478 = vst [vmem:[#allocation11 + $0x38] sm:$0xff] %v2415_v36   ;;  %v1901_v39 = vadd.f32 %v3443_v40, %v1900_v37 }
 0x3b4   :  { %v1902_v47 = vpop.f32.mrf.mxu1 }
 0x3b6   :  { %v1903_v38 = vpop.f32.mrf.mxu1 }
 0x3b7   :  { %v1904_v48 = vadd.f32 %v3443_v40, %v1903_v38 }
 0x3b8   :  { %v1905_v0 = vpop.f32.mrf.mxu1 }
 0x3b9   :  { %v2420_v54 = vpack.c.bf16 %v1904_v48, %v1901_v39 }
 0x3ba   :  { %v1908_v51 = vpop.f32.mrf.mxu1 }
 0x3bb   :  { %2479 = vst [vmem:[#allocation11 + $0x40] sm:$0xff] %v2420_v54   ;;  %v1909_v45 = vadd.f32 %v3443_v40, %v1908_v51 }
 0x3bc   :  { %v1910_v41 = vpop.f32.mrf.mxu1 }
 0x3be   :  { %v1911_v42 = vpop.f32.mrf.mxu1 }
 0x3bf   :  { %v1912_v28 = vadd.f32 %v3443_v40, %v1911_v42 }
 0x3c0   :  { %v1913_v46 = vpop.f32.mrf.mxu1 }
 0x3c1   :  { %v2425_v49 = vpack.c.bf16 %v1912_v28, %v1909_v45 }
 0x3c2   :  { %v1916_v27 = vpop.f32.mrf.mxu1 }
 0x3c3   :  { %2480 = vst [vmem:[#allocation11 + $0x48] sm:$0xff] %v2425_v49   ;;  %v1917_v53 = vadd.f32 %v3443_v40, %v1916_v27 }
 0x3c4   :  { %v1918_v50 = vpop.f32.mrf.mxu1 }
 0x3c6   :  { %v1919_v52 = vpop.f32.mrf.mxu1 }
 0x3c7   :  { %v1920_v55 = vadd.f32 %v3443_v40, %v1919_v52 }
 0x3c8   :  { %v1921_v56 = vpop.f32.mrf.mxu1 }
 0x3c9   :  { %v2430_v57 = vpack.c.bf16 %v1920_v55, %v1917_v53 }
 0x3ca   :  { %v1924_v58 = vpop.f32.mrf.mxu1 }
 0x3cb   :  { %2481 = vst [vmem:[#allocation11 + $0x50] sm:$0xff] %v2430_v57   ;;  %v1925_v61 = vadd.f32 %v3443_v40, %v1924_v58 }
 0x3cc   :  { %v1926_v59 = vpop.f32.mrf.mxu1 }
 0x3ce   :  { %v1927_v60 = vpop.f32.mrf.mxu1 }
 0x3cf   :  { %v1928_v62 = vadd.f32 %v3443_v40, %v1927_v60 }
 0x3d0   :  { %v1929_v63 = vpop.f32.mrf.mxu1 }
 0x3d1   :  { %v2435_v1 = vpack.c.bf16 %v1928_v62, %v1925_v61 }
 0x3d2   :  { %v1932_v2 = vpop.f32.mrf.mxu1 }
 0x3d3   :  { %2482 = vst [vmem:[#allocation11 + $0x58] sm:$0xff] %v2435_v1   ;;  %v1933_v5 = vadd.f32 %v3443_v40, %v1932_v2 }
 0x3d4   :  { %v1934_v3 = vpop.f32.mrf.mxu1 }
 0x3d6   :  { %v1935_v4 = vpop.f32.mrf.mxu1 }
 0x3d7   :  { %v1936_v6 = vadd.f32 %v3443_v40, %v1935_v4 }
 0x3d8   :  { %v1937_v7 = vpop.f32.mrf.mxu1 }
 0x3d9   :  { %v2440_v8 = vpack.c.bf16 %v1936_v6, %v1933_v5 }
 0x3da   :  { %v1940_v9 = vpop.f32.mrf.mxu1 }
 0x3db   :  { %2483 = vst [vmem:[#allocation11 + $0x60] sm:$0xff] %v2440_v8   ;;  %v1941_v12 = vadd.f32 %v3443_v40, %v1940_v9 }
 0x3dc   :  { %v1942_v10 = vpop.f32.mrf.mxu1 }
 0x3de   :  { %v1943_v11 = vpop.f32.mrf.mxu1 }
 0x3df   :  { %v1944_v13 = vadd.f32 %v3443_v40, %v1943_v11 }
 0x3e0   :  { %v1945_v14 = vpop.f32.mrf.mxu1 }
 0x3e1   :  { %v2445_v15 = vpack.c.bf16 %v1944_v13, %v1941_v12 }
 0x3e2   :  { %v1948_v16 = vpop.f32.mrf.mxu1 }
 0x3e3   :  { %2484 = vst [vmem:[#allocation11 + $0x68] sm:$0xff] %v2445_v15   ;;  %v1949_v19 = vadd.f32 %v3443_v40, %v1948_v16 }
 0x3e4   :  { %v1950_v17 = vpop.f32.mrf.mxu1 }
 0x3e6   :  { %v1951_v18 = vpop.f32.mrf.mxu1 }
 0x3e7   :  { %v1952_v20 = vadd.f32 %v3443_v40, %v1951_v18 }
 0x3e8   :  { %v1953_v21 = vpop.f32.mrf.mxu1 }
 0x3e9   :  { %v2450_v22 = vpack.c.bf16 %v1952_v20, %v1949_v19 }
 0x3ea   :  { %v1956_v23 = vpop.f32.mrf.mxu1 }
 0x3eb   :  { %2485 = vst [vmem:[#allocation11 + $0x70] sm:$0xff] %v2450_v22   ;;  %v1957_v26 = vadd.f32 %v3443_v40, %v1956_v23 }
 0x3ec   :  { %v1958_v24 = vpop.f32.mrf.mxu1 }
 0x3ee   :  { %v1959_v25 = vpop.f32.mrf.mxu1 }
 0x3ef   :  { %v1960_v44 = vadd.f32 %v3443_v40, %v1959_v25 }
 0x3f0   :  { %v1961_v29 = vpop.f32.mrf.mxu1 }
 0x3f1   :  { %v2455_v43 = vpack.c.bf16 %v1960_v44, %v1957_v26 }
 0x3f2   :  { %v1964_v30 = vpop.f32.mrf.mxu1 }
 0x3f3   :  { %2486 = vst [vmem:[#allocation11 + $0x78] sm:$0xff] %v2455_v43   ;;  %v1965_v33 = vadd.f32 %v3443_v40, %v1964_v30 }
 0x3f4   :  { %v1966_v31 = vpop.f32.mrf.mxu1 }
 0x3f6   :  { %v1967_v32 = vpop.f32.mrf.mxu1 }
 0x3f7   :  { %v1968_v34 = vadd.f32 %v3443_v40, %v1967_v32 }
 0x3f8   :  { %v1969_v35 = vpop.f32.mrf.mxu1 }
 0x3f9   :  { %v2460_v36 = vpack.c.bf16 %v1968_v34, %v1965_v33 }
 0x3fa   :  { %v1972_v37 = vpop.f32.mrf.mxu1 }
 0x3fb   :  { %2487 = vst [vmem:[#allocation11 + $0x80] sm:$0xff] %v2460_v36   ;;  %v1973_v39 = vadd.f32 %v3443_v40, %v1972_v37 }
 0x3fc   :  { %v1974_v47 = vpop.f32.mrf.mxu1 }
 0x3fe   :  { %v1975_v38 = vpop.f32.mrf.mxu1 }
 0x3ff   :  { %v1976_v48 = vadd.f32 %v3443_v40, %v1975_v38 }
 0x400   :  { %v1977_v0 = vpop.f32.mrf.mxu1 }
 0x401   :  { %v2465_v54 = vpack.c.bf16 %v1976_v48, %v1973_v39 }
 0x402   :  { %v1980_v51 = vpop.f32.mrf.mxu1 }
 0x403   :  { %2488 = vst [vmem:[#allocation11 + $0x88] sm:$0xff] %v2465_v54   ;;  %v1981_v45 = vadd.f32 %v3443_v40, %v1980_v51 }
 0x404   :  { %v1982_v41 = vpop.f32.mrf.mxu1 }
 0x406   :  { %v1983_v42 = vpop.f32.mrf.mxu1 }
 0x407   :  { %v1984_v28 = vadd.f32 %v3443_v40, %v1983_v42 }
 0x408   :  { %v1985_v46 = vpop.f32.mrf.mxu1 }
 0x409   :  { %v2470_v49 = vpack.c.bf16 %v1984_v28, %v1981_v45 }
 0x40b   :  { %2489 = vst [vmem:[#allocation11 + $0x90] sm:$0xff] %v2470_v49  }
 0x40c   :  { %2761 = shalt.err (!%p2758_p1)
}
 0x40d   :  { %s2787_s23 = smov 64   ;;  %s2788_s24 = smov 4  }
 0x40e   :  { %2188 = dma.vmem_to_hbm [thread:$0]  %s2183_s4, 2432, %s3495_s9, [#allocation4], %s2787_s23, %s2787_s23, %s2788_s24  }
 0x40f   :  { %2776 = dma.done.wait [#allocation4], 2432  }
 0x410   :  { %2777 = vsyncadd [#allocation4], 4294964864 }
 0x411   :  { %2192 = vsyncpa [#allocation3], 1 }
 0x412   :  { %2193 = vsyncpa [#allocation6], 1 }
 0x413   :  { %2194 = vsyncpa [#allocation9], 1 }
 0x414   :  { %2195 = vsyncpa [#allocation4], 1 }

</bundles_post_ra>
